<compile_context>
chip_gen: v6e
topology: v6e:2x2x1
jax: 0.10.0
libtpu: 0.0.40
codegen_flags: <defaults>
</compile_context>

<pallas_src>
import functools

import jax
import jax.numpy as jnp
from jax.experimental import pallas as pl
from jax.experimental.pallas import tpu as pltpu


def _lstm_model_kernel(H, L, T, B, Dout,
                       x_ref, wmlp_ref, wlstm_ref, misc_ref,
                       out_ref,
                       seq_ref, gx_ref):
    bf = jnp.bfloat16
    f32 = jnp.float32

    # Per-column activation constants for the packed (i, f, g, o) gate tile.
    # sigmoid(x) = 0.5*tanh(0.5*x) + 0.5 ; tanh(x) = 1.0*tanh(1.0*x) + 0.0
    # -> act = s_vec * tanh(s_vec * gates) + c_vec  (one full-width EUP pass).
    # Hoisted once (JAX does not CSE broadcasts inside the unrolled loop).
    col = jax.lax.broadcasted_iota(jnp.int32, (1, 4 * H), 1)
    is_g = jnp.logical_and(col >= 2 * H, col < 3 * H)
    s_vec = jnp.where(is_g, 1.0, 0.5).astype(f32)
    c_vec = jnp.where(is_g, 0.0, 0.5).astype(f32)

    # Packed bias / head slab (f32):
    #   row 0            : [b1 | b2 | 0 | 0]
    #   rows 1..L        : combined LSTM biases (b_ih + b_hh) per layer
    #   rows 1+L..L+Dout : out_layer weight rows (Dout, H), lane-padded to 4H
    #   row 1+L+Dout     : out_layer bias, lane-padded to 4H
    misc = misc_ref[...]
    b1 = misc[0:1, 0:H]
    b2 = misc[0:1, H:2 * H]

    # ---- embedding MLP: Linear -> ReLU -> Linear -> ReLU (bf16 matmul, f32 acc) ----
    xt = x_ref[...].astype(bf)                                     # (T*B, H) time-major, lane-padded
    h1 = jnp.maximum(
        jnp.dot(xt, wmlp_ref[0], preferred_element_type=f32) + b1, 0.0)
    h2 = jnp.maximum(
        jnp.dot(h1.astype(bf), wmlp_ref[1], preferred_element_type=f32) + b2, 0.0)
    seq_ref[...] = h2                                              # (T*B, H) f32 layer input

    # ---- stacked LSTM, zero initial (h, c), PyTorch gate order (i, f, g, o) ----
    h = jnp.zeros((B, H), f32)
    for layer in range(L):                                         # static layer loop
        w_l = wlstm_ref[layer]                                     # (2H, 4H) bf16
        w_ih = w_l[0:H]                                            # (H, 4H)
        w_hh = w_l[H:2 * H]                                        # (H, 4H)
        b = misc[1 + layer:2 + layer, :]                           # (1, 4H) = b_ih + b_hh

        # Hoisted input projection: one big matmul for ALL timesteps of this layer.
        gx_ref[...] = (jnp.dot(seq_ref[...].astype(bf), w_ih,
                               preferred_element_type=f32) + b)

        last_layer = layer == L - 1
        c = jnp.zeros((B, H), f32)
        for t in range(T):                                         # fully unrolled recurrence
            row = t * B
            gates = gx_ref[pl.ds(row, B), :]
            if t > 0:
                # t == 0: h is zero -> skip the recurrent matmul entirely.
                gates = gates + jnp.dot(h.astype(bf), w_hh,
                                        preferred_element_type=f32)
            act = s_vec * jnp.tanh(gates * s_vec) + c_vec          # all 4 gates, one EUP pass
            # TODO(synk): if the bundle dump shows these 32-lane extracts as
            #             lane-shifts on the critical path, realign via pltpu.roll.
            i_g = act[:, 0:H]
            f_g = act[:, H:2 * H]
            g_g = act[:, 2 * H:3 * H]
            o_g = act[:, 3 * H:4 * H]
            if t == 0:
                c = i_g * g_g                                      # c was zero
            else:
                c = f_g * c + i_g * g_g
            h = o_g * jnp.tanh(c)
            if not last_layer:                                     # last layer's per-step
                seq_ref[pl.ds(row, B), :] = h                      # outputs are never read

    # ---- output head on output[:, -1, :] (== top-layer h at the last step) ----
    w_out = misc[1 + L:1 + L + Dout, 0:H]                          # (Dout, H)
    b_out = misc[1 + L + Dout:2 + L + Dout, 0:Dout]                # (1, Dout)
    if Dout == 1:
        # N=1 matmul wastes a full MXU pass: VPU multiply + lane reduction instead.
        out_ref[...] = jnp.sum(h * w_out, axis=-1, keepdims=True) + b_out
    else:
        out_ref[...] = (jax.lax.dot_general(
            h, w_out, (((1,), (1,)), ((), ())),
            preferred_element_type=f32) + b_out)


def lstm_model_forward(x, params, hidden, num_layers):
    B, T, Din = x.shape
    H = hidden
    L = num_layers
    Dout = params["w_out"].shape[1]
    bf = jnp.bfloat16
    f32 = jnp.float32
    assert Din <= H and Dout <= H, "operand packing assumes input/output dims <= hidden"

    # Pad batch to a full f32 sublane group; padded rows are discarded after the call.
    B_pad = max(8, ((B + 7) // 8) * 8)
    # Pad the feature dim to H (zero cols) so w1 can share a slab with w2; pad rows
    # of w1 are zero so the product is bit-identical.  Time-major transpose + flatten
    # done by XLA in HBM -> kernel body has no transposes/reshapes.
    x_p = jnp.pad(x, ((0, B_pad - B), (0, 0), (0, H - Din)))
    x_tm = jnp.transpose(x_p, (1, 0, 2)).reshape(T * B_pad, H)

    # --- operand packing: 10 small arrays -> 3 slabs (+x) => fewer prologue DMAs ---
    w1_pad = jnp.zeros((H, H), f32).at[:Din, :].set(params["w1"])
    w_mlp = jnp.stack([w1_pad, params["w2"]], axis=0).astype(bf)           # (2, H, H)
    w_lstm = jnp.concatenate([params["w_ih"], params["w_hh"]],
                             axis=1).astype(bf)                            # (L, 2H, 4H)

    w_out_t = jnp.transpose(params["w_out"])                               # (Dout, H)
    misc = jnp.zeros((2 + L + Dout, 4 * H), f32)
    misc = misc.at[0, 0:H].set(params["b1"][0])
    misc = misc.at[0, H:2 * H].set(params["b2"][0])
    misc = misc.at[1:1 + L, :].set(params["b_l"][:, 0, :])
    misc = misc.at[1 + L:1 + L + Dout, 0:H].set(w_out_t)
    misc = misc.at[1 + L + Dout, 0:Dout].set(params["b_out"][0])

    def full(shape):
        return pl.BlockSpec(shape, lambda i, s=shape: (0,) * len(s))

    kernel = functools.partial(_lstm_model_kernel, H, L, T, B_pad, Dout)
    out = pl.pallas_call(
        kernel,
        out_shape=jax.ShapeDtypeStruct((B_pad, Dout), f32),
        grid_spec=pltpu.PrefetchScalarGridSpec(
            num_scalar_prefetch=0,
            grid=(1,),
            in_specs=[full(x_tm.shape), full(w_mlp.shape),
                      full(w_lstm.shape), full(misc.shape)],
            out_specs=full((B_pad, Dout)),
            scratch_shapes=[
                pltpu.VMEM((T * B_pad, H), f32),        # layer in/out sequence (f32: aligned stores)
                pltpu.VMEM((T * B_pad, 4 * H), f32),    # hoisted x@W_ih gates
            ],
        ),
        compiler_params=pltpu.CompilerParams(dimension_semantics=("arbitrary",)),
    )(x_tm, w_mlp, w_lstm, misc)
    return jnp.squeeze(out[:B])                                    # matches `.squeeze()`


def reference_forward(x, params, H, L):
    """Pure-JAX reference (PyTorch semantics) mirroring the kernel's precision
    policy: bf16 matmul operands, f32 accumulate, f32 state/elementwise math."""
    bf = jnp.bfloat16
    f32 = jnp.float32
    B, T, _ = x.shape
    w1 = params["w1"].astype(bf)
    w2 = params["w2"].astype(bf)
    w_ih = params["w_ih"].astype(bf)
    w_hh = params["w_hh"].astype(bf)

    h1 = jax.nn.relu(jnp.dot(x.astype(bf), w1, preferred_element_type=f32)
                     + params["b1"][0])
    seq = jax.nn.relu(jnp.dot(h1.astype(bf), w2, preferred_element_type=f32)
                      + params["b2"][0]).astype(bf)                # (B, T, H)
    h = jnp.zeros((B, H), f32)
    for layer in range(L):
        gx = (jnp.dot(seq, w_ih[layer], preferred_element_type=f32)
              + params["b_l"][layer][0])                           # (B, T, 4H)
        h = jnp.zeros((B, H), f32)
        c = jnp.zeros((B, H), f32)
        outs = []
        for t in range(T):
            gates = gx[:, t, :] + jnp.dot(h.astype(bf), w_hh[layer],
                                          preferred_element_type=f32)
            i = jax.nn.sigmoid(gates[:, :H])
            f = jax.nn.sigmoid(gates[:, H:2 * H])
            g = jnp.tanh(gates[:, 2 * H:3 * H])
            o = jax.nn.sigmoid(gates[:, 3 * H:])
            c = f * c + i * g
            h = o * jnp.tanh(c)
            outs.append(h)
        seq = jnp.stack(outs, axis=1).astype(bf)
    out = jnp.dot(h, params["w_out"]) + params["b_out"][0]
    return jnp.squeeze(out)


def init_params(key, input_dim, hidden, num_layers, output_dim):
    ks = jax.random.split(key, 8)
    scale = 0.1
    H = hidden
    return {
        "w1": scale * jax.random.normal(ks[0], (input_dim, H), jnp.float32),
        "b1": scale * jax.random.normal(ks[1], (1, H), jnp.float32),
        "w2": scale * jax.random.normal(ks[2], (H, H), jnp.float32),
        "b2": scale * jax.random.normal(ks[3], (1, H), jnp.float32),
        # LSTM: weights pre-transposed to (in, 4H); bias = b_ih + b_hh combined.
        "w_ih": scale * jax.random.normal(ks[4], (num_layers, H, 4 * H), jnp.float32),
        "w_hh": scale * jax.random.normal(ks[5], (num_layers, H, 4 * H), jnp.float32),
        "b_l": scale * jax.random.normal(ks[6], (num_layers, 1, 4 * H), jnp.float32),
        "w_out": scale * jax.random.normal(ks[7], (H, output_dim), jnp.float32),
        "b_out": jnp.zeros((1, output_dim), jnp.float32),
    }


if __name__ == "__main__":
    B, T = 2, 8                 # batch, sequence length
    INPUT_DIM = 4
    HIDDEN = 32
    NUM_LAYERS = 2
    OUTPUT_DIM = 1              # .squeeze() -> (B,)

    key = jax.random.PRNGKey(0)
    kx, kp = jax.random.split(key)
    x = jax.random.normal(kx, (B, T, INPUT_DIM), jnp.float32)
    params = init_params(kp, INPUT_DIM, HIDDEN, NUM_LAYERS, OUTPUT_DIM)

    out = jax.block_until_ready(lstm_model_forward(x, params, HIDDEN, NUM_LAYERS))
    ref = jax.block_until_ready(reference_forward(x, params, HIDDEN, NUM_LAYERS))

    assert out.shape == ref.shape == (B,), (out.shape, ref.shape)
    assert jnp.allclose(out, ref, atol=2e-3, rtol=2e-3), (out, ref)

    print("KERNEL_OK")
</pallas_src>

<mosaic_0001>
module attributes {stable_mosaic.version = 11 : i64} {
  func.func @_lstm_model_kernel(%arg0: i32, %arg1: memref<64x32xf32, #tpu.memory_space<vmem>>, %arg2: memref<2x32x32xbf16, #tpu.memory_space<vmem>>, %arg3: memref<2x64x128xbf16, #tpu.memory_space<vmem>>, %arg4: memref<5x128xf32, #tpu.memory_space<vmem>>, %arg5: memref<8x1xf32, #tpu.memory_space<vmem>>, %arg6: memref<64x32xf32, #tpu.memory_space<vmem>>, %arg7: memref<64x128xf32, #tpu.memory_space<vmem>>) attributes {dimension_semantics = [#tpu.dimension_semantics<arbitrary>], iteration_bounds = array<i64: 1>, scalar_prefetch = 0 : i64, scratch_operands = 2 : i64, tpu.core_type = #tpu.core_type<tc>, window_params = [{pipeline_mode = #tpu.pipeline_mode<synchronous>, transform_indices = @transform_0, window_bounds = array<i64: 64, 32>}, {pipeline_mode = #tpu.pipeline_mode<synchronous>, transform_indices = @transform_1, window_bounds = array<i64: 2, 32, 32>}, {pipeline_mode = #tpu.pipeline_mode<synchronous>, transform_indices = @transform_2, window_bounds = array<i64: 2, 64, 128>}, {pipeline_mode = #tpu.pipeline_mode<synchronous>, transform_indices = @transform_3, window_bounds = array<i64: 5, 128>}, {pipeline_mode = #tpu.pipeline_mode<synchronous>, transform_indices = @transform_4, window_bounds = array<i64: 8, 1>}]} {
    %0 = tpu.iota {dimensions = array<i32: 1>} : vector<1x128xi32>
    %c64_i32 = arith.constant 64 : i32
    %1 = vector.broadcast %c64_i32 : i32 to vector<1x128xi32>
    %2 = arith.cmpi sge, %0, %1 : vector<1x128xi32>
    %c96_i32 = arith.constant 96 : i32
    %3 = vector.broadcast %c96_i32 : i32 to vector<1x128xi32>
    %4 = arith.cmpi slt, %0, %3 : vector<1x128xi32>
    %5 = arith.andi %2, %4 : vector<1x128xi1>
    %cst = arith.constant 1.000000e+00 : f32
    %cst_0 = arith.constant 5.000000e-01 : f32
    %6 = vector.broadcast %cst : f32 to vector<1x128xf32>
    %7 = vector.broadcast %cst_0 : f32 to vector<1x128xf32>
    %8 = arith.select %5, %6, %7 : vector<1x128xi1>, vector<1x128xf32>
    %cst_1 = arith.constant 0.000000e+00 : f32
    %cst_2 = arith.constant 5.000000e-01 : f32
    %9 = vector.broadcast %cst_1 : f32 to vector<1x128xf32>
    %10 = vector.broadcast %cst_2 : f32 to vector<1x128xf32>
    %11 = arith.select %5, %9, %10 : vector<1x128xi1>, vector<1x128xf32>
    %c0 = arith.constant 0 : index
    %c0_3 = arith.constant 0 : index
    %12 = vector.load %arg4[%c0, %c0_3] : memref<5x128xf32, #tpu.memory_space<vmem>>, vector<5x128xf32>
    %13 = vector.extract_strided_slice %12 {offsets = [0, 0], sizes = [1, 32], strides = [1, 1]} : vector<5x128xf32> to vector<1x32xf32>
    %14 = vector.extract_strided_slice %12 {offsets = [0, 32], sizes = [1, 32], strides = [1, 1]} : vector<5x128xf32> to vector<1x32xf32>
    %c0_4 = arith.constant 0 : index
    %c0_5 = arith.constant 0 : index
    %15 = vector.load %arg1[%c0_4, %c0_5] : memref<64x32xf32, #tpu.memory_space<vmem>>, vector<64x32xf32>
    %16 = arith.truncf %15 : vector<64x32xf32> to vector<64x32xbf16>
    %c0_6 = arith.constant 0 : index
    %c0_7 = arith.constant 0 : index
    %c0_8 = arith.constant 0 : index
    %17 = vector.load %arg2[%c0_6, %c0_7, %c0_8] : memref<2x32x32xbf16, #tpu.memory_space<vmem>>, vector<1x32x32xbf16>
    %18 = vector.shape_cast %17 : vector<1x32x32xbf16> to vector<32x32xbf16>
    %cst_9 = arith.constant dense<0.000000e+00> : vector<64x32xf32>
    %19 = tpu.matmul %16, %18, %cst_9 {dimension_numbers = #tpu.dot_dimension_numbers<[1], [0], [0], [1], [0, 0, 1, 1], [], []>} : vector<64x32xbf16>, vector<32x32xbf16>, vector<64x32xf32> -> vector<64x32xf32>
    %20 = vector.broadcast %13 : vector<1x32xf32> to vector<64x32xf32>
    %21 = arith.addf %19, %20 : vector<64x32xf32>
    %cst_10 = arith.constant 0.000000e+00 : f32
    %22 = vector.broadcast %cst_10 : f32 to vector<64x32xf32>
    %23 = arith.maximumf %21, %22 : vector<64x32xf32>
    %24 = arith.truncf %23 : vector<64x32xf32> to vector<64x32xbf16>
    %c1 = arith.constant 1 : index
    %c0_11 = arith.constant 0 : index
    %c0_12 = arith.constant 0 : index
    %25 = vector.load %arg2[%c1, %c0_11, %c0_12] : memref<2x32x32xbf16, #tpu.memory_space<vmem>>, vector<1x32x32xbf16>
    %26 = vector.shape_cast %25 : vector<1x32x32xbf16> to vector<32x32xbf16>
    %cst_13 = arith.constant dense<0.000000e+00> : vector<64x32xf32>
    %27 = tpu.matmul %24, %26, %cst_13 {dimension_numbers = #tpu.dot_dimension_numbers<[1], [0], [0], [1], [0, 0, 1, 1], [], []>} : vector<64x32xbf16>, vector<32x32xbf16>, vector<64x32xf32> -> vector<64x32xf32>
    %28 = vector.broadcast %14 : vector<1x32xf32> to vector<64x32xf32>
    %29 = arith.addf %27, %28 : vector<64x32xf32>
    %cst_14 = arith.constant 0.000000e+00 : f32
    %30 = vector.broadcast %cst_14 : f32 to vector<64x32xf32>
    %31 = arith.maximumf %29, %30 : vector<64x32xf32>
    %c0_15 = arith.constant 0 : index
    %c0_16 = arith.constant 0 : index
    %32 = vector.load %arg6[%c0_15, %c0_16] : memref<64x32xf32, #tpu.memory_space<vmem>>, vector<64x32xf32>
    tpu.vector_store %arg6[%c0_15, %c0_16], %31 {strides = array<i32>} : memref<64x32xf32, #tpu.memory_space<vmem>>, vector<64x32xf32>,
    %c0_17 = arith.constant 0 : index
    %c0_18 = arith.constant 0 : index
    %c0_19 = arith.constant 0 : index
    %33 = vector.load %arg3[%c0_17, %c0_18, %c0_19] : memref<2x64x128xbf16, #tpu.memory_space<vmem>>, vector<1x64x128xbf16>
    %34 = vector.shape_cast %33 : vector<1x64x128xbf16> to vector<64x128xbf16>
    %35 = vector.extract_strided_slice %34 {offsets = [0, 0], sizes = [32, 128], strides = [1, 1]} : vector<64x128xbf16> to vector<32x128xbf16>
    %36 = vector.extract_strided_slice %34 {offsets = [32, 0], sizes = [32, 128], strides = [1, 1]} : vector<64x128xbf16> to vector<32x128xbf16>
    %37 = vector.extract_strided_slice %12 {offsets = [1, 0], sizes = [1, 128], strides = [1, 1]} : vector<5x128xf32> to vector<1x128xf32>
    %c0_20 = arith.constant 0 : index
    %c0_21 = arith.constant 0 : index
    %38 = vector.load %arg6[%c0_20, %c0_21] : memref<64x32xf32, #tpu.memory_space<vmem>>, vector<64x32xf32>
    %39 = arith.truncf %38 : vector<64x32xf32> to vector<64x32xbf16>
    %cst_22 = arith.constant dense<0.000000e+00> : vector<64x128xf32>
    %40 = tpu.matmul %39, %35, %cst_22 {dimension_numbers = #tpu.dot_dimension_numbers<[1], [0], [0], [1], [0, 0, 1, 1], [], []>} : vector<64x32xbf16>, vector<32x128xbf16>, vector<64x128xf32> -> vector<64x128xf32>
    %41 = vector.broadcast %37 : vector<1x128xf32> to vector<64x128xf32>
    %42 = arith.addf %40, %41 : vector<64x128xf32>
    %c0_23 = arith.constant 0 : index
    %c0_24 = arith.constant 0 : index
    %43 = vector.load %arg7[%c0_23, %c0_24] : memref<64x128xf32, #tpu.memory_space<vmem>>, vector<64x128xf32>
    tpu.vector_store %arg7[%c0_23, %c0_24], %42 {strides = array<i32>} : memref<64x128xf32, #tpu.memory_space<vmem>>, vector<64x128xf32>,
    %c0_25 = arith.constant 0 : index
    %c0_26 = arith.constant 0 : index
    %44 = vector.load %arg7[%c0_25, %c0_26] : memref<64x128xf32, #tpu.memory_space<vmem>>, vector<8x128xf32>
    %45 = vector.broadcast %8 : vector<1x128xf32> to vector<8x128xf32>
    %46 = arith.mulf %44, %45 : vector<8x128xf32>
    %47 = math.tanh %46 : vector<8x128xf32>
    %48 = vector.broadcast %8 : vector<1x128xf32> to vector<8x128xf32>
    %49 = arith.mulf %48, %47 : vector<8x128xf32>
    %50 = vector.broadcast %11 : vector<1x128xf32> to vector<8x128xf32>
    %51 = arith.addf %49, %50 : vector<8x128xf32>
    %52 = vector.extract_strided_slice %51 {offsets = [0, 0], sizes = [8, 32], strides = [1, 1]} : vector<8x128xf32> to vector<8x32xf32>
    %53 = vector.extract_strided_slice %51 {offsets = [0, 64], sizes = [8, 32], strides = [1, 1]} : vector<8x128xf32> to vector<8x32xf32>
    %54 = vector.extract_strided_slice %51 {offsets = [0, 96], sizes = [8, 32], strides = [1, 1]} : vector<8x128xf32> to vector<8x32xf32>
    %55 = arith.mulf %52, %53 : vector<8x32xf32>
    %56 = math.tanh %55 : vector<8x32xf32>
    %57 = arith.mulf %54, %56 : vector<8x32xf32>
    %c0_27 = arith.constant 0 : index
    %c0_28 = arith.constant 0 : index
    %58 = vector.load %arg6[%c0_27, %c0_28] : memref<64x32xf32, #tpu.memory_space<vmem>>, vector<8x32xf32>
    tpu.vector_store %arg6[%c0_27, %c0_28], %57 {strides = array<i32>} : memref<64x32xf32, #tpu.memory_space<vmem>>, vector<8x32xf32>,
    %c8 = arith.constant 8 : index
    %c0_29 = arith.constant 0 : index
    %59 = vector.load %arg7[%c8, %c0_29] : memref<64x128xf32, #tpu.memory_space<vmem>>, vector<8x128xf32>
    %60 = arith.truncf %57 : vector<8x32xf32> to vector<8x32xbf16>
    %cst_30 = arith.constant dense<0.000000e+00> : vector<8x128xf32>
    %61 = tpu.matmul %60, %36, %cst_30 {dimension_numbers = #tpu.dot_dimension_numbers<[1], [0], [0], [1], [0, 0, 1, 1], [], []>} : vector<8x32xbf16>, vector<32x128xbf16>, vector<8x128xf32> -> vector<8x128xf32>
    %62 = arith.addf %59, %61 : vector<8x128xf32>
    %63 = vector.broadcast %8 : vector<1x128xf32> to vector<8x128xf32>
    %64 = arith.mulf %62, %63 : vector<8x128xf32>
    %65 = math.tanh %64 : vector<8x128xf32>
    %66 = vector.broadcast %8 : vector<1x128xf32> to vector<8x128xf32>
    %67 = arith.mulf %66, %65 : vector<8x128xf32>
    %68 = vector.broadcast %11 : vector<1x128xf32> to vector<8x128xf32>
    %69 = arith.addf %67, %68 : vector<8x128xf32>
    %70 = vector.extract_strided_slice %69 {offsets = [0, 0], sizes = [8, 32], strides = [1, 1]} : vector<8x128xf32> to vector<8x32xf32>
    %71 = vector.extract_strided_slice %69 {offsets = [0, 32], sizes = [8, 32], strides = [1, 1]} : vector<8x128xf32> to vector<8x32xf32>
    %72 = vector.extract_strided_slice %69 {offsets = [0, 64], sizes = [8, 32], strides = [1, 1]} : vector<8x128xf32> to vector<8x32xf32>
    %73 = vector.extract_strided_slice %69 {offsets = [0, 96], sizes = [8, 32], strides = [1, 1]} : vector<8x128xf32> to vector<8x32xf32>
    %74 = arith.mulf %71, %55 : vector<8x32xf32>
    %75 = arith.mulf %70, %72 : vector<8x32xf32>
    %76 = arith.addf %74, %75 : vector<8x32xf32>
    %77 = math.tanh %76 : vector<8x32xf32>
    %78 = arith.mulf %73, %77 : vector<8x32xf32>
    %c8_31 = arith.constant 8 : index
    %c0_32 = arith.constant 0 : index
    %79 = vector.load %arg6[%c8_31, %c0_32] : memref<64x32xf32, #tpu.memory_space<vmem>>, vector<8x32xf32>
    tpu.vector_store %arg6[%c8_31, %c0_32], %78 {strides = array<i32>} : memref<64x32xf32, #tpu.memory_space<vmem>>, vector<8x32xf32>,
    %c16 = arith.constant 16 : index
    %c0_33 = arith.constant 0 : index
    %80 = vector.load %arg7[%c16, %c0_33] : memref<64x128xf32, #tpu.memory_space<vmem>>, vector<8x128xf32>
    %81 = arith.truncf %78 : vector<8x32xf32> to vector<8x32xbf16>
    %cst_34 = arith.constant dense<0.000000e+00> : vector<8x128xf32>
    %82 = tpu.matmul %81, %36, %cst_34 {dimension_numbers = #tpu.dot_dimension_numbers<[1], [0], [0], [1], [0, 0, 1, 1], [], []>} : vector<8x32xbf16>, vector<32x128xbf16>, vector<8x128xf32> -> vector<8x128xf32>
    %83 = arith.addf %80, %82 : vector<8x128xf32>
    %84 = vector.broadcast %8 : vector<1x128xf32> to vector<8x128xf32>
    %85 = arith.mulf %83, %84 : vector<8x128xf32>
    %86 = math.tanh %85 : vector<8x128xf32>
    %87 = vector.broadcast %8 : vector<1x128xf32> to vector<8x128xf32>
    %88 = arith.mulf %87, %86 : vector<8x128xf32>
    %89 = vector.broadcast %11 : vector<1x128xf32> to vector<8x128xf32>
    %90 = arith.addf %88, %89 : vector<8x128xf32>
    %91 = vector.extract_strided_slice %90 {offsets = [0, 0], sizes = [8, 32], strides = [1, 1]} : vector<8x128xf32> to vector<8x32xf32>
    %92 = vector.extract_strided_slice %90 {offsets = [0, 32], sizes = [8, 32], strides = [1, 1]} : vector<8x128xf32> to vector<8x32xf32>
    %93 = vector.extract_strided_slice %90 {offsets = [0, 64], sizes = [8, 32], strides = [1, 1]} : vector<8x128xf32> to vector<8x32xf32>
    %94 = vector.extract_strided_slice %90 {offsets = [0, 96], sizes = [8, 32], strides = [1, 1]} : vector<8x128xf32> to vector<8x32xf32>
    %95 = arith.mulf %92, %76 : vector<8x32xf32>
    %96 = arith.mulf %91, %93 : vector<8x32xf32>
    %97 = arith.addf %95, %96 : vector<8x32xf32>
    %98 = math.tanh %97 : vector<8x32xf32>
    %99 = arith.mulf %94, %98 : vector<8x32xf32>
    %c16_35 = arith.constant 16 : index
    %c0_36 = arith.constant 0 : index
    %100 = vector.load %arg6[%c16_35, %c0_36] : memref<64x32xf32, #tpu.memory_space<vmem>>, vector<8x32xf32>
    tpu.vector_store %arg6[%c16_35, %c0_36], %99 {strides = array<i32>} : memref<64x32xf32, #tpu.memory_space<vmem>>, vector<8x32xf32>,
    %c24 = arith.constant 24 : index
    %c0_37 = arith.constant 0 : index
    %101 = vector.load %arg7[%c24, %c0_37] : memref<64x128xf32, #tpu.memory_space<vmem>>, vector<8x128xf32>
    %102 = arith.truncf %99 : vector<8x32xf32> to vector<8x32xbf16>
    %cst_38 = arith.constant dense<0.000000e+00> : vector<8x128xf32>
    %103 = tpu.matmul %102, %36, %cst_38 {dimension_numbers = #tpu.dot_dimension_numbers<[1], [0], [0], [1], [0, 0, 1, 1], [], []>} : vector<8x32xbf16>, vector<32x128xbf16>, vector<8x128xf32> -> vector<8x128xf32>
    %104 = arith.addf %101, %103 : vector<8x128xf32>
    %105 = vector.broadcast %8 : vector<1x128xf32> to vector<8x128xf32>
    %106 = arith.mulf %104, %105 : vector<8x128xf32>
    %107 = math.tanh %106 : vector<8x128xf32>
    %108 = vector.broadcast %8 : vector<1x128xf32> to vector<8x128xf32>
    %109 = arith.mulf %108, %107 : vector<8x128xf32>
    %110 = vector.broadcast %11 : vector<1x128xf32> to vector<8x128xf32>
    %111 = arith.addf %109, %110 : vector<8x128xf32>
    %112 = vector.extract_strided_slice %111 {offsets = [0, 0], sizes = [8, 32], strides = [1, 1]} : vector<8x128xf32> to vector<8x32xf32>
    %113 = vector.extract_strided_slice %111 {offsets = [0, 32], sizes = [8, 32], strides = [1, 1]} : vector<8x128xf32> to vector<8x32xf32>
    %114 = vector.extract_strided_slice %111 {offsets = [0, 64], sizes = [8, 32], strides = [1, 1]} : vector<8x128xf32> to vector<8x32xf32>
    %115 = vector.extract_strided_slice %111 {offsets = [0, 96], sizes = [8, 32], strides = [1, 1]} : vector<8x128xf32> to vector<8x32xf32>
    %116 = arith.mulf %113, %97 : vector<8x32xf32>
    %117 = arith.mulf %112, %114 : vector<8x32xf32>
    %118 = arith.addf %116, %117 : vector<8x32xf32>
    %119 = math.tanh %118 : vector<8x32xf32>
    %120 = arith.mulf %115, %119 : vector<8x32xf32>
    %c24_39 = arith.constant 24 : index
    %c0_40 = arith.constant 0 : index
    %121 = vector.load %arg6[%c24_39, %c0_40] : memref<64x32xf32, #tpu.memory_space<vmem>>, vector<8x32xf32>
    tpu.vector_store %arg6[%c24_39, %c0_40], %120 {strides = array<i32>} : memref<64x32xf32, #tpu.memory_space<vmem>>, vector<8x32xf32>,
    %c32 = arith.constant 32 : index
    %c0_41 = arith.constant 0 : index
    %122 = vector.load %arg7[%c32, %c0_41] : memref<64x128xf32, #tpu.memory_space<vmem>>, vector<8x128xf32>
    %123 = arith.truncf %120 : vector<8x32xf32> to vector<8x32xbf16>
    %cst_42 = arith.constant dense<0.000000e+00> : vector<8x128xf32>
    %124 = tpu.matmul %123, %36, %cst_42 {dimension_numbers = #tpu.dot_dimension_numbers<[1], [0], [0], [1], [0, 0, 1, 1], [], []>} : vector<8x32xbf16>, vector<32x128xbf16>, vector<8x128xf32> -> vector<8x128xf32>
    %125 = arith.addf %122, %124 : vector<8x128xf32>
    %126 = vector.broadcast %8 : vector<1x128xf32> to vector<8x128xf32>
    %127 = arith.mulf %125, %126 : vector<8x128xf32>
    %128 = math.tanh %127 : vector<8x128xf32>
    %129 = vector.broadcast %8 : vector<1x128xf32> to vector<8x128xf32>
    %130 = arith.mulf %129, %128 : vector<8x128xf32>
    %131 = vector.broadcast %11 : vector<1x128xf32> to vector<8x128xf32>
    %132 = arith.addf %130, %131 : vector<8x128xf32>
    %133 = vector.extract_strided_slice %132 {offsets = [0, 0], sizes = [8, 32], strides = [1, 1]} : vector<8x128xf32> to vector<8x32xf32>
    %134 = vector.extract_strided_slice %132 {offsets = [0, 32], sizes = [8, 32], strides = [1, 1]} : vector<8x128xf32> to vector<8x32xf32>
    %135 = vector.extract_strided_slice %132 {offsets = [0, 64], sizes = [8, 32], strides = [1, 1]} : vector<8x128xf32> to vector<8x32xf32>
    %136 = vector.extract_strided_slice %132 {offsets = [0, 96], sizes = [8, 32], strides = [1, 1]} : vector<8x128xf32> to vector<8x32xf32>
    %137 = arith.mulf %134, %118 : vector<8x32xf32>
    %138 = arith.mulf %133, %135 : vector<8x32xf32>
    %139 = arith.addf %137, %138 : vector<8x32xf32>
    %140 = math.tanh %139 : vector<8x32xf32>
    %141 = arith.mulf %136, %140 : vector<8x32xf32>
    %c32_43 = arith.constant 32 : index
    %c0_44 = arith.constant 0 : index
    %142 = vector.load %arg6[%c32_43, %c0_44] : memref<64x32xf32, #tpu.memory_space<vmem>>, vector<8x32xf32>
    tpu.vector_store %arg6[%c32_43, %c0_44], %141 {strides = array<i32>} : memref<64x32xf32, #tpu.memory_space<vmem>>, vector<8x32xf32>,
    %c40 = arith.constant 40 : index
    %c0_45 = arith.constant 0 : index
    %143 = vector.load %arg7[%c40, %c0_45] : memref<64x128xf32, #tpu.memory_space<vmem>>, vector<8x128xf32>
    %144 = arith.truncf %141 : vector<8x32xf32> to vector<8x32xbf16>
    %cst_46 = arith.constant dense<0.000000e+00> : vector<8x128xf32>
    %145 = tpu.matmul %144, %36, %cst_46 {dimension_numbers = #tpu.dot_dimension_numbers<[1], [0], [0], [1], [0, 0, 1, 1], [], []>} : vector<8x32xbf16>, vector<32x128xbf16>, vector<8x128xf32> -> vector<8x128xf32>
    %146 = arith.addf %143, %145 : vector<8x128xf32>
    %147 = vector.broadcast %8 : vector<1x128xf32> to vector<8x128xf32>
    %148 = arith.mulf %146, %147 : vector<8x128xf32>
    %149 = math.tanh %148 : vector<8x128xf32>
    %150 = vector.broadcast %8 : vector<1x128xf32> to vector<8x128xf32>
    %151 = arith.mulf %150, %149 : vector<8x128xf32>
    %152 = vector.broadcast %11 : vector<1x128xf32> to vector<8x128xf32>
    %153 = arith.addf %151, %152 : vector<8x128xf32>
    %154 = vector.extract_strided_slice %153 {offsets = [0, 0], sizes = [8, 32], strides = [1, 1]} : vector<8x128xf32> to vector<8x32xf32>
    %155 = vector.extract_strided_slice %153 {offsets = [0, 32], sizes = [8, 32], strides = [1, 1]} : vector<8x128xf32> to vector<8x32xf32>
    %156 = vector.extract_strided_slice %153 {offsets = [0, 64], sizes = [8, 32], strides = [1, 1]} : vector<8x128xf32> to vector<8x32xf32>
    %157 = vector.extract_strided_slice %153 {offsets = [0, 96], sizes = [8, 32], strides = [1, 1]} : vector<8x128xf32> to vector<8x32xf32>
    %158 = arith.mulf %155, %139 : vector<8x32xf32>
    %159 = arith.mulf %154, %156 : vector<8x32xf32>
    %160 = arith.addf %158, %159 : vector<8x32xf32>
    %161 = math.tanh %160 : vector<8x32xf32>
    %162 = arith.mulf %157, %161 : vector<8x32xf32>
    %c40_47 = arith.constant 40 : index
    %c0_48 = arith.constant 0 : index
    %163 = vector.load %arg6[%c40_47, %c0_48] : memref<64x32xf32, #tpu.memory_space<vmem>>, vector<8x32xf32>
    tpu.vector_store %arg6[%c40_47, %c0_48], %162 {strides = array<i32>} : memref<64x32xf32, #tpu.memory_space<vmem>>, vector<8x32xf32>,
    %c48 = arith.constant 48 : index
    %c0_49 = arith.constant 0 : index
    %164 = vector.load %arg7[%c48, %c0_49] : memref<64x128xf32, #tpu.memory_space<vmem>>, vector<8x128xf32>
    %165 = arith.truncf %162 : vector<8x32xf32> to vector<8x32xbf16>
    %cst_50 = arith.constant dense<0.000000e+00> : vector<8x128xf32>
    %166 = tpu.matmul %165, %36, %cst_50 {dimension_numbers = #tpu.dot_dimension_numbers<[1], [0], [0], [1], [0, 0, 1, 1], [], []>} : vector<8x32xbf16>, vector<32x128xbf16>, vector<8x128xf32> -> vector<8x128xf32>
    %167 = arith.addf %164, %166 : vector<8x128xf32>
    %168 = vector.broadcast %8 : vector<1x128xf32> to vector<8x128xf32>
    %169 = arith.mulf %167, %168 : vector<8x128xf32>
    %170 = math.tanh %169 : vector<8x128xf32>
    %171 = vector.broadcast %8 : vector<1x128xf32> to vector<8x128xf32>
    %172 = arith.mulf %171, %170 : vector<8x128xf32>
    %173 = vector.broadcast %11 : vector<1x128xf32> to vector<8x128xf32>
    %174 = arith.addf %172, %173 : vector<8x128xf32>
    %175 = vector.extract_strided_slice %174 {offsets = [0, 0], sizes = [8, 32], strides = [1, 1]} : vector<8x128xf32> to vector<8x32xf32>
    %176 = vector.extract_strided_slice %174 {offsets = [0, 32], sizes = [8, 32], strides = [1, 1]} : vector<8x128xf32> to vector<8x32xf32>
    %177 = vector.extract_strided_slice %174 {offsets = [0, 64], sizes = [8, 32], strides = [1, 1]} : vector<8x128xf32> to vector<8x32xf32>
    %178 = vector.extract_strided_slice %174 {offsets = [0, 96], sizes = [8, 32], strides = [1, 1]} : vector<8x128xf32> to vector<8x32xf32>
    %179 = arith.mulf %176, %160 : vector<8x32xf32>
    %180 = arith.mulf %175, %177 : vector<8x32xf32>
    %181 = arith.addf %179, %180 : vector<8x32xf32>
    %182 = math.tanh %181 : vector<8x32xf32>
    %183 = arith.mulf %178, %182 : vector<8x32xf32>
    %c48_51 = arith.constant 48 : index
    %c0_52 = arith.constant 0 : index
    %184 = vector.load %arg6[%c48_51, %c0_52] : memref<64x32xf32, #tpu.memory_space<vmem>>, vector<8x32xf32>
    tpu.vector_store %arg6[%c48_51, %c0_52], %183 {strides = array<i32>} : memref<64x32xf32, #tpu.memory_space<vmem>>, vector<8x32xf32>,
    %c56 = arith.constant 56 : index
    %c0_53 = arith.constant 0 : index
    %185 = vector.load %arg7[%c56, %c0_53] : memref<64x128xf32, #tpu.memory_space<vmem>>, vector<8x128xf32>
    %186 = arith.truncf %183 : vector<8x32xf32> to vector<8x32xbf16>
    %cst_54 = arith.constant dense<0.000000e+00> : vector<8x128xf32>
    %187 = tpu.matmul %186, %36, %cst_54 {dimension_numbers = #tpu.dot_dimension_numbers<[1], [0], [0], [1], [0, 0, 1, 1], [], []>} : vector<8x32xbf16>, vector<32x128xbf16>, vector<8x128xf32> -> vector<8x128xf32>
    %188 = arith.addf %185, %187 : vector<8x128xf32>
    %189 = vector.broadcast %8 : vector<1x128xf32> to vector<8x128xf32>
    %190 = arith.mulf %188, %189 : vector<8x128xf32>
    %191 = math.tanh %190 : vector<8x128xf32>
    %192 = vector.broadcast %8 : vector<1x128xf32> to vector<8x128xf32>
    %193 = arith.mulf %192, %191 : vector<8x128xf32>
    %194 = vector.broadcast %11 : vector<1x128xf32> to vector<8x128xf32>
    %195 = arith.addf %193, %194 : vector<8x128xf32>
    %196 = vector.extract_strided_slice %195 {offsets = [0, 0], sizes = [8, 32], strides = [1, 1]} : vector<8x128xf32> to vector<8x32xf32>
    %197 = vector.extract_strided_slice %195 {offsets = [0, 32], sizes = [8, 32], strides = [1, 1]} : vector<8x128xf32> to vector<8x32xf32>
    %198 = vector.extract_strided_slice %195 {offsets = [0, 64], sizes = [8, 32], strides = [1, 1]} : vector<8x128xf32> to vector<8x32xf32>
    %199 = vector.extract_strided_slice %195 {offsets = [0, 96], sizes = [8, 32], strides = [1, 1]} : vector<8x128xf32> to vector<8x32xf32>
    %200 = arith.mulf %197, %181 : vector<8x32xf32>
    %201 = arith.mulf %196, %198 : vector<8x32xf32>
    %202 = arith.addf %200, %201 : vector<8x32xf32>
    %203 = math.tanh %202 : vector<8x32xf32>
    %204 = arith.mulf %199, %203 : vector<8x32xf32>
    %c56_55 = arith.constant 56 : index
    %c0_56 = arith.constant 0 : index
    %205 = vector.load %arg6[%c56_55, %c0_56] : memref<64x32xf32, #tpu.memory_space<vmem>>, vector<8x32xf32>
    tpu.vector_store %arg6[%c56_55, %c0_56], %204 {strides = array<i32>} : memref<64x32xf32, #tpu.memory_space<vmem>>, vector<8x32xf32>,
    %c1_57 = arith.constant 1 : index
    %c0_58 = arith.constant 0 : index
    %c0_59 = arith.constant 0 : index
    %206 = vector.load %arg3[%c1_57, %c0_58, %c0_59] : memref<2x64x128xbf16, #tpu.memory_space<vmem>>, vector<1x64x128xbf16>
    %207 = vector.shape_cast %206 : vector<1x64x128xbf16> to vector<64x128xbf16>
    %208 = vector.extract_strided_slice %207 {offsets = [0, 0], sizes = [32, 128], strides = [1, 1]} : vector<64x128xbf16> to vector<32x128xbf16>
    %209 = vector.extract_strided_slice %207 {offsets = [32, 0], sizes = [32, 128], strides = [1, 1]} : vector<64x128xbf16> to vector<32x128xbf16>
    %210 = vector.extract_strided_slice %12 {offsets = [2, 0], sizes = [1, 128], strides = [1, 1]} : vector<5x128xf32> to vector<1x128xf32>
    %c0_60 = arith.constant 0 : index
    %c0_61 = arith.constant 0 : index
    %211 = vector.load %arg6[%c0_60, %c0_61] : memref<64x32xf32, #tpu.memory_space<vmem>>, vector<64x32xf32>
    %212 = arith.truncf %211 : vector<64x32xf32> to vector<64x32xbf16>
    %cst_62 = arith.constant dense<0.000000e+00> : vector<64x128xf32>
    %213 = tpu.matmul %212, %208, %cst_62 {dimension_numbers = #tpu.dot_dimension_numbers<[1], [0], [0], [1], [0, 0, 1, 1], [], []>} : vector<64x32xbf16>, vector<32x128xbf16>, vector<64x128xf32> -> vector<64x128xf32>
    %214 = vector.broadcast %210 : vector<1x128xf32> to vector<64x128xf32>
    %215 = arith.addf %213, %214 : vector<64x128xf32>
    %c0_63 = arith.constant 0 : index
    %c0_64 = arith.constant 0 : index
    %216 = vector.load %arg7[%c0_63, %c0_64] : memref<64x128xf32, #tpu.memory_space<vmem>>, vector<64x128xf32>
    tpu.vector_store %arg7[%c0_63, %c0_64], %215 {strides = array<i32>} : memref<64x128xf32, #tpu.memory_space<vmem>>, vector<64x128xf32>,
    %c0_65 = arith.constant 0 : index
    %c0_66 = arith.constant 0 : index
    %217 = vector.load %arg7[%c0_65, %c0_66] : memref<64x128xf32, #tpu.memory_space<vmem>>, vector<8x128xf32>
    %218 = vector.broadcast %8 : vector<1x128xf32> to vector<8x128xf32>
    %219 = arith.mulf %217, %218 : vector<8x128xf32>
    %220 = math.tanh %219 : vector<8x128xf32>
    %221 = vector.broadcast %8 : vector<1x128xf32> to vector<8x128xf32>
    %222 = arith.mulf %221, %220 : vector<8x128xf32>
    %223 = vector.broadcast %11 : vector<1x128xf32> to vector<8x128xf32>
    %224 = arith.addf %222, %223 : vector<8x128xf32>
    %225 = vector.extract_strided_slice %224 {offsets = [0, 0], sizes = [8, 32], strides = [1, 1]} : vector<8x128xf32> to vector<8x32xf32>
    %226 = vector.extract_strided_slice %224 {offsets = [0, 64], sizes = [8, 32], strides = [1, 1]} : vector<8x128xf32> to vector<8x32xf32>
    %227 = vector.extract_strided_slice %224 {offsets = [0, 96], sizes = [8, 32], strides = [1, 1]} : vector<8x128xf32> to vector<8x32xf32>
    %228 = arith.mulf %225, %226 : vector<8x32xf32>
    %229 = math.tanh %228 : vector<8x32xf32>
    %230 = arith.mulf %227, %229 : vector<8x32xf32>
    %c8_67 = arith.constant 8 : index
    %c0_68 = arith.constant 0 : index
    %231 = vector.load %arg7[%c8_67, %c0_68] : memref<64x128xf32, #tpu.memory_space<vmem>>, vector<8x128xf32>
    %232 = arith.truncf %230 : vector<8x32xf32> to vector<8x32xbf16>
    %cst_69 = arith.constant dense<0.000000e+00> : vector<8x128xf32>
    %233 = tpu.matmul %232, %209, %cst_69 {dimension_numbers = #tpu.dot_dimension_numbers<[1], [0], [0], [1], [0, 0, 1, 1], [], []>} : vector<8x32xbf16>, vector<32x128xbf16>, vector<8x128xf32> -> vector<8x128xf32>
    %234 = arith.addf %231, %233 : vector<8x128xf32>
    %235 = vector.broadcast %8 : vector<1x128xf32> to vector<8x128xf32>
    %236 = arith.mulf %234, %235 : vector<8x128xf32>
    %237 = math.tanh %236 : vector<8x128xf32>
    %238 = vector.broadcast %8 : vector<1x128xf32> to vector<8x128xf32>
    %239 = arith.mulf %238, %237 : vector<8x128xf32>
    %240 = vector.broadcast %11 : vector<1x128xf32> to vector<8x128xf32>
    %241 = arith.addf %239, %240 : vector<8x128xf32>
    %242 = vector.extract_strided_slice %241 {offsets = [0, 0], sizes = [8, 32], strides = [1, 1]} : vector<8x128xf32> to vector<8x32xf32>
    %243 = vector.extract_strided_slice %241 {offsets = [0, 32], sizes = [8, 32], strides = [1, 1]} : vector<8x128xf32> to vector<8x32xf32>
    %244 = vector.extract_strided_slice %241 {offsets = [0, 64], sizes = [8, 32], strides = [1, 1]} : vector<8x128xf32> to vector<8x32xf32>
    %245 = vector.extract_strided_slice %241 {offsets = [0, 96], sizes = [8, 32], strides = [1, 1]} : vector<8x128xf32> to vector<8x32xf32>
    %246 = arith.mulf %243, %228 : vector<8x32xf32>
    %247 = arith.mulf %242, %244 : vector<8x32xf32>
    %248 = arith.addf %246, %247 : vector<8x32xf32>
    %249 = math.tanh %248 : vector<8x32xf32>
    %250 = arith.mulf %245, %249 : vector<8x32xf32>
    %c16_70 = arith.constant 16 : index
    %c0_71 = arith.constant 0 : index
    %251 = vector.load %arg7[%c16_70, %c0_71] : memref<64x128xf32, #tpu.memory_space<vmem>>, vector<8x128xf32>
    %252 = arith.truncf %250 : vector<8x32xf32> to vector<8x32xbf16>
    %cst_72 = arith.constant dense<0.000000e+00> : vector<8x128xf32>
    %253 = tpu.matmul %252, %209, %cst_72 {dimension_numbers = #tpu.dot_dimension_numbers<[1], [0], [0], [1], [0, 0, 1, 1], [], []>} : vector<8x32xbf16>, vector<32x128xbf16>, vector<8x128xf32> -> vector<8x128xf32>
    %254 = arith.addf %251, %253 : vector<8x128xf32>
    %255 = vector.broadcast %8 : vector<1x128xf32> to vector<8x128xf32>
    %256 = arith.mulf %254, %255 : vector<8x128xf32>
    %257 = math.tanh %256 : vector<8x128xf32>
    %258 = vector.broadcast %8 : vector<1x128xf32> to vector<8x128xf32>
    %259 = arith.mulf %258, %257 : vector<8x128xf32>
    %260 = vector.broadcast %11 : vector<1x128xf32> to vector<8x128xf32>
    %261 = arith.addf %259, %260 : vector<8x128xf32>
    %262 = vector.extract_strided_slice %261 {offsets = [0, 0], sizes = [8, 32], strides = [1, 1]} : vector<8x128xf32> to vector<8x32xf32>
    %263 = vector.extract_strided_slice %261 {offsets = [0, 32], sizes = [8, 32], strides = [1, 1]} : vector<8x128xf32> to vector<8x32xf32>
    %264 = vector.extract_strided_slice %261 {offsets = [0, 64], sizes = [8, 32], strides = [1, 1]} : vector<8x128xf32> to vector<8x32xf32>
    %265 = vector.extract_strided_slice %261 {offsets = [0, 96], sizes = [8, 32], strides = [1, 1]} : vector<8x128xf32> to vector<8x32xf32>
    %266 = arith.mulf %263, %248 : vector<8x32xf32>
    %267 = arith.mulf %262, %264 : vector<8x32xf32>
    %268 = arith.addf %266, %267 : vector<8x32xf32>
    %269 = math.tanh %268 : vector<8x32xf32>
    %270 = arith.mulf %265, %269 : vector<8x32xf32>
    %c24_73 = arith.constant 24 : index
    %c0_74 = arith.constant 0 : index
    %271 = vector.load %arg7[%c24_73, %c0_74] : memref<64x128xf32, #tpu.memory_space<vmem>>, vector<8x128xf32>
    %272 = arith.truncf %270 : vector<8x32xf32> to vector<8x32xbf16>
    %cst_75 = arith.constant dense<0.000000e+00> : vector<8x128xf32>
    %273 = tpu.matmul %272, %209, %cst_75 {dimension_numbers = #tpu.dot_dimension_numbers<[1], [0], [0], [1], [0, 0, 1, 1], [], []>} : vector<8x32xbf16>, vector<32x128xbf16>, vector<8x128xf32> -> vector<8x128xf32>
    %274 = arith.addf %271, %273 : vector<8x128xf32>
    %275 = vector.broadcast %8 : vector<1x128xf32> to vector<8x128xf32>
    %276 = arith.mulf %274, %275 : vector<8x128xf32>
    %277 = math.tanh %276 : vector<8x128xf32>
    %278 = vector.broadcast %8 : vector<1x128xf32> to vector<8x128xf32>
    %279 = arith.mulf %278, %277 : vector<8x128xf32>
    %280 = vector.broadcast %11 : vector<1x128xf32> to vector<8x128xf32>
    %281 = arith.addf %279, %280 : vector<8x128xf32>
    %282 = vector.extract_strided_slice %281 {offsets = [0, 0], sizes = [8, 32], strides = [1, 1]} : vector<8x128xf32> to vector<8x32xf32>
    %283 = vector.extract_strided_slice %281 {offsets = [0, 32], sizes = [8, 32], strides = [1, 1]} : vector<8x128xf32> to vector<8x32xf32>
    %284 = vector.extract_strided_slice %281 {offsets = [0, 64], sizes = [8, 32], strides = [1, 1]} : vector<8x128xf32> to vector<8x32xf32>
    %285 = vector.extract_strided_slice %281 {offsets = [0, 96], sizes = [8, 32], strides = [1, 1]} : vector<8x128xf32> to vector<8x32xf32>
    %286 = arith.mulf %283, %268 : vector<8x32xf32>
    %287 = arith.mulf %282, %284 : vector<8x32xf32>
    %288 = arith.addf %286, %287 : vector<8x32xf32>
    %289 = math.tanh %288 : vector<8x32xf32>
    %290 = arith.mulf %285, %289 : vector<8x32xf32>
    %c32_76 = arith.constant 32 : index
    %c0_77 = arith.constant 0 : index
    %291 = vector.load %arg7[%c32_76, %c0_77] : memref<64x128xf32, #tpu.memory_space<vmem>>, vector<8x128xf32>
    %292 = arith.truncf %290 : vector<8x32xf32> to vector<8x32xbf16>
    %cst_78 = arith.constant dense<0.000000e+00> : vector<8x128xf32>
    %293 = tpu.matmul %292, %209, %cst_78 {dimension_numbers = #tpu.dot_dimension_numbers<[1], [0], [0], [1], [0, 0, 1, 1], [], []>} : vector<8x32xbf16>, vector<32x128xbf16>, vector<8x128xf32> -> vector<8x128xf32>
    %294 = arith.addf %291, %293 : vector<8x128xf32>
    %295 = vector.broadcast %8 : vector<1x128xf32> to vector<8x128xf32>
    %296 = arith.mulf %294, %295 : vector<8x128xf32>
    %297 = math.tanh %296 : vector<8x128xf32>
    %298 = vector.broadcast %8 : vector<1x128xf32> to vector<8x128xf32>
    %299 = arith.mulf %298, %297 : vector<8x128xf32>
    %300 = vector.broadcast %11 : vector<1x128xf32> to vector<8x128xf32>
    %301 = arith.addf %299, %300 : vector<8x128xf32>
    %302 = vector.extract_strided_slice %301 {offsets = [0, 0], sizes = [8, 32], strides = [1, 1]} : vector<8x128xf32> to vector<8x32xf32>
    %303 = vector.extract_strided_slice %301 {offsets = [0, 32], sizes = [8, 32], strides = [1, 1]} : vector<8x128xf32> to vector<8x32xf32>
    %304 = vector.extract_strided_slice %301 {offsets = [0, 64], sizes = [8, 32], strides = [1, 1]} : vector<8x128xf32> to vector<8x32xf32>
    %305 = vector.extract_strided_slice %301 {offsets = [0, 96], sizes = [8, 32], strides = [1, 1]} : vector<8x128xf32> to vector<8x32xf32>
    %306 = arith.mulf %303, %288 : vector<8x32xf32>
    %307 = arith.mulf %302, %304 : vector<8x32xf32>
    %308 = arith.addf %306, %307 : vector<8x32xf32>
    %309 = math.tanh %308 : vector<8x32xf32>
    %310 = arith.mulf %305, %309 : vector<8x32xf32>
    %c40_79 = arith.constant 40 : index
    %c0_80 = arith.constant 0 : index
    %311 = vector.load %arg7[%c40_79, %c0_80] : memref<64x128xf32, #tpu.memory_space<vmem>>, vector<8x128xf32>
    %312 = arith.truncf %310 : vector<8x32xf32> to vector<8x32xbf16>
    %cst_81 = arith.constant dense<0.000000e+00> : vector<8x128xf32>
    %313 = tpu.matmul %312, %209, %cst_81 {dimension_numbers = #tpu.dot_dimension_numbers<[1], [0], [0], [1], [0, 0, 1, 1], [], []>} : vector<8x32xbf16>, vector<32x128xbf16>, vector<8x128xf32> -> vector<8x128xf32>
    %314 = arith.addf %311, %313 : vector<8x128xf32>
    %315 = vector.broadcast %8 : vector<1x128xf32> to vector<8x128xf32>
    %316 = arith.mulf %314, %315 : vector<8x128xf32>
    %317 = math.tanh %316 : vector<8x128xf32>
    %318 = vector.broadcast %8 : vector<1x128xf32> to vector<8x128xf32>
    %319 = arith.mulf %318, %317 : vector<8x128xf32>
    %320 = vector.broadcast %11 : vector<1x128xf32> to vector<8x128xf32>
    %321 = arith.addf %319, %320 : vector<8x128xf32>
    %322 = vector.extract_strided_slice %321 {offsets = [0, 0], sizes = [8, 32], strides = [1, 1]} : vector<8x128xf32> to vector<8x32xf32>
    %323 = vector.extract_strided_slice %321 {offsets = [0, 32], sizes = [8, 32], strides = [1, 1]} : vector<8x128xf32> to vector<8x32xf32>
    %324 = vector.extract_strided_slice %321 {offsets = [0, 64], sizes = [8, 32], strides = [1, 1]} : vector<8x128xf32> to vector<8x32xf32>
    %325 = vector.extract_strided_slice %321 {offsets = [0, 96], sizes = [8, 32], strides = [1, 1]} : vector<8x128xf32> to vector<8x32xf32>
    %326 = arith.mulf %323, %308 : vector<8x32xf32>
    %327 = arith.mulf %322, %324 : vector<8x32xf32>
    %328 = arith.addf %326, %327 : vector<8x32xf32>
    %329 = math.tanh %328 : vector<8x32xf32>
    %330 = arith.mulf %325, %329 : vector<8x32xf32>
    %c48_82 = arith.constant 48 : index
    %c0_83 = arith.constant 0 : index
    %331 = vector.load %arg7[%c48_82, %c0_83] : memref<64x128xf32, #tpu.memory_space<vmem>>, vector<8x128xf32>
    %332 = arith.truncf %330 : vector<8x32xf32> to vector<8x32xbf16>
    %cst_84 = arith.constant dense<0.000000e+00> : vector<8x128xf32>
    %333 = tpu.matmul %332, %209, %cst_84 {dimension_numbers = #tpu.dot_dimension_numbers<[1], [0], [0], [1], [0, 0, 1, 1], [], []>} : vector<8x32xbf16>, vector<32x128xbf16>, vector<8x128xf32> -> vector<8x128xf32>
    %334 = arith.addf %331, %333 : vector<8x128xf32>
    %335 = vector.broadcast %8 : vector<1x128xf32> to vector<8x128xf32>
    %336 = arith.mulf %334, %335 : vector<8x128xf32>
    %337 = math.tanh %336 : vector<8x128xf32>
    %338 = vector.broadcast %8 : vector<1x128xf32> to vector<8x128xf32>
    %339 = arith.mulf %338, %337 : vector<8x128xf32>
    %340 = vector.broadcast %11 : vector<1x128xf32> to vector<8x128xf32>
    %341 = arith.addf %339, %340 : vector<8x128xf32>
    %342 = vector.extract_strided_slice %341 {offsets = [0, 0], sizes = [8, 32], strides = [1, 1]} : vector<8x128xf32> to vector<8x32xf32>
    %343 = vector.extract_strided_slice %341 {offsets = [0, 32], sizes = [8, 32], strides = [1, 1]} : vector<8x128xf32> to vector<8x32xf32>
    %344 = vector.extract_strided_slice %341 {offsets = [0, 64], sizes = [8, 32], strides = [1, 1]} : vector<8x128xf32> to vector<8x32xf32>
    %345 = vector.extract_strided_slice %341 {offsets = [0, 96], sizes = [8, 32], strides = [1, 1]} : vector<8x128xf32> to vector<8x32xf32>
    %346 = arith.mulf %343, %328 : vector<8x32xf32>
    %347 = arith.mulf %342, %344 : vector<8x32xf32>
    %348 = arith.addf %346, %347 : vector<8x32xf32>
    %349 = math.tanh %348 : vector<8x32xf32>
    %350 = arith.mulf %345, %349 : vector<8x32xf32>
    %c56_85 = arith.constant 56 : index
    %c0_86 = arith.constant 0 : index
    %351 = vector.load %arg7[%c56_85, %c0_86] : memref<64x128xf32, #tpu.memory_space<vmem>>, vector<8x128xf32>
    %352 = arith.truncf %350 : vector<8x32xf32> to vector<8x32xbf16>
    %cst_87 = arith.constant dense<0.000000e+00> : vector<8x128xf32>
    %353 = tpu.matmul %352, %209, %cst_87 {dimension_numbers = #tpu.dot_dimension_numbers<[1], [0], [0], [1], [0, 0, 1, 1], [], []>} : vector<8x32xbf16>, vector<32x128xbf16>, vector<8x128xf32> -> vector<8x128xf32>
    %354 = arith.addf %351, %353 : vector<8x128xf32>
    %355 = vector.broadcast %8 : vector<1x128xf32> to vector<8x128xf32>
    %356 = arith.mulf %354, %355 : vector<8x128xf32>
    %357 = math.tanh %356 : vector<8x128xf32>
    %358 = vector.broadcast %8 : vector<1x128xf32> to vector<8x128xf32>
    %359 = arith.mulf %358, %357 : vector<8x128xf32>
    %360 = vector.broadcast %11 : vector<1x128xf32> to vector<8x128xf32>
    %361 = arith.addf %359, %360 : vector<8x128xf32>
    %362 = vector.extract_strided_slice %361 {offsets = [0, 0], sizes = [8, 32], strides = [1, 1]} : vector<8x128xf32> to vector<8x32xf32>
    %363 = vector.extract_strided_slice %361 {offsets = [0, 32], sizes = [8, 32], strides = [1, 1]} : vector<8x128xf32> to vector<8x32xf32>
    %364 = vector.extract_strided_slice %361 {offsets = [0, 64], sizes = [8, 32], strides = [1, 1]} : vector<8x128xf32> to vector<8x32xf32>
    %365 = vector.extract_strided_slice %361 {offsets = [0, 96], sizes = [8, 32], strides = [1, 1]} : vector<8x128xf32> to vector<8x32xf32>
    %366 = arith.mulf %363, %348 : vector<8x32xf32>
    %367 = arith.mulf %362, %364 : vector<8x32xf32>
    %368 = arith.addf %366, %367 : vector<8x32xf32>
    %369 = math.tanh %368 : vector<8x32xf32>
    %370 = arith.mulf %365, %369 : vector<8x32xf32>
    %371 = vector.extract_strided_slice %12 {offsets = [3, 0], sizes = [1, 32], strides = [1, 1]} : vector<5x128xf32> to vector<1x32xf32>
    %372 = vector.extract_strided_slice %12 {offsets = [4, 0], sizes = [1, 1], strides = [1, 1]} : vector<5x128xf32> to vector<1x1xf32>
    %373 = vector.broadcast %371 : vector<1x32xf32> to vector<8x32xf32>
    %374 = arith.mulf %370, %373 : vector<8x32xf32>
    %cst_88 = arith.constant dense<0.000000e+00> : vector<8xf32>
    %375 = vector.multi_reduction <add>, %374, %cst_88 [1] : vector<8x32xf32> to vector<8xf32>
    %376 = vector.shape_cast %375 : vector<8xf32> to vector<8x1xf32>
    %377 = vector.broadcast %372 : vector<1x1xf32> to vector<8x1xf32>
    %378 = arith.addf %376, %377 : vector<8x1xf32>
    %c0_89 = arith.constant 0 : index
    %c0_90 = arith.constant 0 : index
    %379 = vector.load %arg5[%c0_89, %c0_90] : memref<8x1xf32, #tpu.memory_space<vmem>>, vector<8x1xf32>
    tpu.vector_store %arg5[%c0_89, %c0_90], %378 {strides = array<i32>} : memref<8x1xf32, #tpu.memory_space<vmem>>, vector<8x1xf32>,
    return
  }
  func.func @transform_0(%arg0: i32) -> (i32, i32) {
    %c0_i32 = arith.constant 0 : i32
    %c0_i32_0 = arith.constant 0 : i32
    %c0_i32_1 = arith.constant 0 : i32
    return %c0_i32, %c0_i32_0 : i32, i32
  }
  func.func @transform_1(%arg0: i32) -> (i32, i32, i32) {
    %c0_i32 = arith.constant 0 : i32
    %c0_i32_0 = arith.constant 0 : i32
    %c0_i32_1 = arith.constant 0 : i32
    %c0_i32_2 = arith.constant 0 : i32
    return %c0_i32, %c0_i32_0, %c0_i32_1 : i32, i32, i32
  }
  func.func @transform_2(%arg0: i32) -> (i32, i32, i32) {
    %c0_i32 = arith.constant 0 : i32
    %c0_i32_0 = arith.constant 0 : i32
    %c0_i32_1 = arith.constant 0 : i32
    %c0_i32_2 = arith.constant 0 : i32
    return %c0_i32, %c0_i32_0, %c0_i32_1 : i32, i32, i32
  }
  func.func @transform_3(%arg0: i32) -> (i32, i32) {
    %c0_i32 = arith.constant 0 : i32
    %c0_i32_0 = arith.constant 0 : i32
    %c0_i32_1 = arith.constant 0 : i32
    return %c0_i32, %c0_i32_0 : i32, i32
  }
  func.func @transform_4(%arg0: i32) -> (i32, i32) {
    %c0_i32 = arith.constant 0 : i32
    %c0_i32_0 = arith.constant 0 : i32
    %c0_i32_1 = arith.constant 0 : i32
    return %c0_i32, %c0_i32_0 : i32, i32
  }
}

</mosaic_0001>

<bundles_post_ra>
// kernel: tpu_custom_call.1
= control target key start
LH: loop header
LB: loop body
LE: loop exit
PB: predicated region body
PF: predicated region fallthrough
CT: control target
= control target key end

     0   :  { %9 = vsyncpa [#allocation5], 0  ;;  %s2015_s15 = smov [#allocation4]   ;;  %s2492_s0 = inlined_call_operand.vmem [shape: f32[64,32], index: 0, kind: input, shape index: {}]   ;;  %s2493_s1 = inlined_call_operand.vmem [shape: bf16[2,32,32], index: 1, kind: input, shape index: {}]   ;;  %s2494_s2 = inlined_call_operand.vmem [shape: bf16[2,64,128], index: 2, kind: input, shape index: {}]   ;;  %s2495_s3 = inlined_call_operand.hbm [shape: f32[5,128], index: 3, kind: input, shape index: {}]   ;;  %s2496_s4 = inlined_call_operand.vmem [shape: f32[8,1], index: 4, kind: output, shape index: {}]  }
   0x1   :  { %s22_s16 = sshll.u32 %s2015_s15, 4  ;;  %s23_s16 = int_to_ptr.vmem [resolvable:$true] %s22_s16 }
   0x2   :  { %s2001_s17 = scalar_lea.vmem %s23_s16, 128  ;;  %p2006_p1 = scmp.lt.s32.totalorder %s23_s16, %s23_s16 }
   0x3   :  { %p2002_p0 = scmp.ne.s32.totalorder %s23_s16, %s2001_s17  ;;  %p2007_p2 = scmp.lt.s32.totalorder %s2001_s17, %s2001_s17 }
   0x5   :  { %p2008_p3 = por %p2007_p2, %p2006_p1 }
   0x7   :  { %p2009_p4 = pnand %p2008_p3, %p2002_p0 }
   0x9   :  { %2012 = shalt.err (!%p2009_p4)
}
   0xa   :  { %25 = dma.hbm_to_vmem [thread:$0]  %s2495_s3, 128, %s23_s16, [#allocation5]  }
   0xb   :  { %2013 = dma.done.wait [#allocation5], 128  }
   0xc   :  { %2014 = vsyncadd [#allocation5], 4294967168  ;;  %v1916_v0 = vld [vmem:[%s2493_s1 + $0x8] sm:$0xff]   ;;  %v1917_v1 = vld [vmem:[%s2493_s1] sm:$0xff]   ;;  %vm70_vm0 = vcmask 261120   ;;  %v30_v16 = vlaneseq  ;;  %s2018_s20 = smov 64  }
   0xd   :  { %1749 = vmatprep.subr.bf16.mxu0 %v1916_v0  ;;  %v38_v2 = vld [vmem:[%s2492_s0] sm:$0xff]  ;;  %v39_v3 = vld [vmem:[%s2492_s0 + $0x8] sm:$0xff]  ;;  %v40_v5 = vld [vmem:[%s2492_s0 + $0x10] sm:$0xff]  ;;  %vm2020_vm4 = vmmov 0   ;;  %s2021_s25 = smov 32   ;;  %vm1622_vm5 = vcmask 7168  }
   0xe   :  { %1750 = vmatpush3.bf16.msra.mxu0 %v1916_v0  ;;  %v46_v4 = vpack.c.bf16 %v39_v3, %v38_v2  ;;  %v41_v6 = vld [vmem:[%s2492_s0 + $0x18] sm:$0xff]  ;;  %v42_v7 = vld [vmem:[%s2492_s0 + $0x20] sm:$0xff]  ;;  %v43_v8 = vld [vmem:[%s2492_s0 + $0x28] sm:$0xff]  ;;  %v2091_v17 = vshrl.u32 %v30_v16, 7 }
   0xf   :  { %1751 = vmatprep.subr.bf16.mxu0 %v1917_v1  ;;  %v47_v9 = vpack.c.bf16 %v41_v6, %v40_v5  ;;  %v48_v10 = vpack.c.bf16 %v43_v8, %v42_v7  ;;  %v44_v11 = vld [vmem:[%s2492_s0 + $0x30] sm:$0xff]  ;;  %v45_v12 = vld [vmem:[%s2492_s0 + $0x38] sm:$0xff]  ;;  %v2094_v19 = vld [vmem:[#allocation4] sm:$0x1f]  ;;  %s2016_s0 = smov 96  }
  0x10   :  { %1753 = vmatprep.mubr.msk.bf16.mxu0 %vm70_vm0, %v46_v4  ;;  %v49_v13 = vpack.c.bf16 %v45_v12, %v44_v11  ;;  %v1918_v14 = vld [vmem:[%s2493_s1 + $0x18] sm:$0xff]   ;;  %v1919_v15 = vld [vmem:[%s2493_s1 + $0x10] sm:$0xff]   ;;  %v56_v18 = vsub.s32 0, %v2091_v17  ;;  %v1920_v49 = vld [vmem:[%s2494_s2 + $0x8] sm:$0xff]  }
  0x11   :  { %1761 = vmatprep.subr.bf16.mxu1 %v1918_v14  ;;  %v1921_v50 = vld [vmem:[%s2494_s2] sm:$0xff]  }
  0x12   :  { %1752 = vmatpush3.bf16.msra.mxu0 %v1917_v1  ;;  %1762 = vmatpush3.bf16.msra.mxu1 %v1918_v14  ;;  %v57_v20 = vrot.slane %v2094_v19, %v56_v18 }
  0x13   :  { %1763 = vmatprep.subr.bf16.mxu1 %v1919_v15  ;;  %1773 = vmatprep.subr.bf16.mxu0 %v1920_v49 }
  0x14   :  { %178 = vrot.lane.b32.xlu0 %v57_v20, %s2016_s0 }
  0x15   :  { %1754 = vmatmul.mubr.msk.bf16.vlgmr.msra.gmra.mxu0 %vm70_vm0, %v47_v9 }
  0x16   :  { %1757 = vmatprep.mubr.msk.bf16.mxu0 %vm70_vm0, %v48_v10  ;;  %1764 = vmatpush3.bf16.msra.mxu1 %v1919_v15 }
  0x17   :  { %1774 = vmatpush3.bf16.msra.mxu0 %v1920_v49 }
  0x18   :  { %1775 = vmatprep.subr.bf16.mxu0 %v1921_v50 }
  0x1b   :  { %1776 = vmatpush3.bf16.msra.mxu0 %v1921_v50 }
  0x1d   :  { %1758 = vmatmul.mubr.msk.bf16.gmra.mxu0 %vm70_vm0, %v49_v13 }
  0x86   :  { %v179_v51 = vpop.permute.xlu0 %178 }
  0xd5   :  { %v1755_v21 = vpop.f32.mrf.mxu0 }
  0xd6   :  { %v126_v26 = vadd.f32 %v1755_v21, %v57_v20 }
  0xd7   :  { %v117_v22 = vpop.f32.mrf.mxu0 }
  0xd8   :  { %v118_v24 = vadd.f32 %v117_v22, %v57_v20  ;;  %v150_v33 = vmax.f32 %v126_v26, 0.0 }
  0xd9   :  { %v1756_v23 = vpop.f32.mrf.mxu0 }
  0xda   :  { %v129_v25 = vadd.f32 %v1756_v23, %v57_v20  ;;  %v148_v31 = vmax.f32 %v118_v24, 0.0 }
  0xdb   :  { %v120_v27 = vpop.f32.mrf.mxu0 }
  0xdc   :  { %v121_v28 = vadd.f32 %v120_v27, %v57_v20  ;;  %v151_v29 = vmax.f32 %v129_v25, 0.0  ;;  %v31_v27 = vand.u32 127, %v30_v16 }
  0xdd   :  { %v1759_v30 = vpop.f32.mrf.mxu0 }
  0xde   :  { %v149_v32 = vmax.f32 %v121_v28, 0.0  ;;  %v142_v34 = vadd.f32 %v1759_v30, %v57_v20  ;;  %v157_v38 = vpack.c.bf16 %v151_v29, %v150_v33  ;;  %v296_v28 = vsub.s32 1, %v2091_v17 }
  0xdf   :  { %v133_v35 = vpop.f32.mrf.mxu0  ;;  %vm32_vm1 = vcmp.ge.s32.totalorder %v31_v27, 64  ;;  %vm33_vm2 = vcmp.lt.s32.totalorder %v31_v27, 96  ;;  %v2017_v33 = vmov 0.5  }
  0xe0   :  { %v134_v36 = vadd.f32 %v133_v35, %v57_v20  ;;  %v156_v37 = vpack.c.bf16 %v149_v32, %v148_v31  ;;  %v154_v41 = vmax.f32 %v142_v34, 0.0  ;;  %v2123_v29 = vrot.slane %v2094_v19, %v296_v28  ;;  %vm2125_vm3 = vmand %vm32_vm1, %vm33_vm2 }
  0xe1   :  { %v1760_v39 = vpop.f32.mrf.mxu0  ;;  %v2134_v34 = vsel %vm2125_vm3, 1.0, %v2017_v33 }
  0xe2   :  { %v145_v40 = vadd.f32 %v1760_v39, %v57_v20  ;;  %1765 = vmatprep.mubr.msk.bf16.mxu1 %vm70_vm0, %v156_v37  ;;  %v152_v43 = vmax.f32 %v134_v36, 0.0 }
  0xe3   :  { %v136_v42 = vpop.f32.mrf.mxu0  ;;  %1766 = vmatmul.mubr.msk.bf16.vlgmr.msra.gmra.mxu1 %vm70_vm0, %v157_v38 }
  0xe4   :  { %v155_v44 = vmax.f32 %v145_v40, 0.0  ;;  %v137_v45 = vadd.f32 %v136_v42, %v57_v20 }
  0xe6   :  { %v153_v46 = vmax.f32 %v137_v45, 0.0  ;;  %v159_v47 = vpack.c.bf16 %v155_v44, %v154_v41 }
  0xe8   :  { %v158_v48 = vpack.c.bf16 %v153_v46, %v152_v43 }
  0xea   :  { %1769 = vmatprep.mubr.msk.bf16.mxu1 %vm70_vm0, %v158_v48 }
  0xeb   :  { %1770 = vmatmul.mubr.msk.bf16.gmra.mxu1 %vm70_vm0, %v159_v47  ;;  %v2152_v47 = vsel %vm2125_vm3, 0.0, %v2017_v33 }
 0x1a3   :  { %v1767_v52 = vpop.f32.mrf.mxu1 }
 0x1a4   :  { %v236_v53 = vadd.f32 %v1767_v52, %v179_v51  ;;  %v2160_v52 = vld [vmem:[%s2494_s2 + $0x18] sm:$0xff]  }
 0x1a5   :  { %v227_v54 = vpop.f32.mrf.mxu1 }
 0x1a6   :  { %v260_v55 = vmax.f32 %v236_v53, 0.0  ;;  %v228_v56 = vadd.f32 %v227_v54, %v179_v51  ;;  %v2019_v53 = vmov 0.0   ;;  %v2169_v54 = vld [vmem:[%s2494_s2 + $0x10] sm:$0xff]  }
 0x1a7   :  { %v1768_v57 = vpop.f32.mrf.mxu1  ;;  %1785 = vmatprep.subr.bf16.mxu1 %v2019_v53  ;;  %1789 = vmatprep.mubr.msk.bf16.mxu1 %vm2020_vm4, %v2019_v53 }
 0x1a8   :  { %268 = vst.msk [vmem:[#allocation2 + $0x10] sm:$0xff] %vm70_vm0, %v260_v55  ;;  %v258_v58 = vmax.f32 %v228_v56, 0.0  ;;  %v239_v59 = vadd.f32 %v1768_v57, %v179_v51  ;;  %1786 = vmatpush3.bf16.msra.mxu1 %v2160_v52  ;;  %1801 = vmatprep.subr.bf16.mxu0 %v2019_v53 }
 0x1a9   :  { %v230_v60 = vpop.f32.mrf.mxu1  ;;  %1787 = vmatprep.subr.bf16.mxu1 %v2019_v53 }
 0x1aa   :  { %266 = vst.msk [vmem:[#allocation2] sm:$0xff] %vm70_vm0, %v258_v58  ;;  %v261_v61 = vmax.f32 %v239_v59, 0.0  ;;  %v231_v62 = vadd.f32 %v230_v60, %v179_v51 }
 0x1ab   :  { %v1771_v63 = vpop.f32.mrf.mxu1 }
 0x1ac   :  { %269 = vst.msk [vmem:[#allocation2 + $0x18] sm:$0xff] %vm70_vm0, %v261_v61  ;;  %v259_v0 = vmax.f32 %v231_v62, 0.0  ;;  %v252_v1 = vadd.f32 %v1771_v63, %v179_v51  ;;  %1788 = vmatpush3.bf16.msra.mxu1 %v2169_v54 }
 0x1ad   :  { %v243_v2 = vpop.f32.mrf.mxu1  ;;  %1793 = vmatprep.subr.bf16.mxu1 %v2019_v53 }
 0x1ae   :  { %267 = vst.msk [vmem:[#allocation2 + $0x8] sm:$0xff] %vm70_vm0, %v259_v0  ;;  %v264_v3 = vmax.f32 %v252_v1, 0.0  ;;  %v244_v4 = vadd.f32 %v243_v2, %v179_v51 }
 0x1af   :  { %v1772_v5 = vpop.f32.mrf.mxu1  ;;  %v284_v18 = vld [vmem:[#allocation2 + $0x10] sm:$0xff] }
 0x1b0   :  { %272 = vst.msk [vmem:[#allocation2 + $0x30] sm:$0xff] %vm70_vm0, %v264_v3  ;;  %v262_v6 = vmax.f32 %v244_v4, 0.0  ;;  %v255_v7 = vadd.f32 %v1772_v5, %v179_v51 }
 0x1b1   :  { %v246_v8 = vpop.f32.mrf.mxu1  ;;  %v282_v13 = vld [vmem:[#allocation2] sm:$0xff] }
 0x1b2   :  { %270 = vst.msk [vmem:[#allocation2 + $0x20] sm:$0xff] %vm70_vm0, %v262_v6  ;;  %v265_v9 = vmax.f32 %v255_v7, 0.0  ;;  %v247_v10 = vadd.f32 %v246_v8, %v179_v51 }
 0x1b3   :  { %v285_v12 = vld [vmem:[#allocation2 + $0x18] sm:$0xff] }
 0x1b4   :  { %273 = vst.msk [vmem:[#allocation2 + $0x38] sm:$0xff] %vm70_vm0, %v265_v9  ;;  %v263_v11 = vmax.f32 %v247_v10, 0.0  ;;  %v291_v20 = vpack.c.bf16 %v285_v12, %v284_v18 }
 0x1b5   :  { %v283_v14 = vld [vmem:[#allocation2 + $0x8] sm:$0xff] }
 0x1b6   :  { %271 = vst.msk [vmem:[#allocation2 + $0x28] sm:$0xff] %vm70_vm0, %v263_v11  ;;  %v290_v15 = vpack.c.bf16 %v283_v14, %v282_v13 }
 0x1b7   :  { %v288_v25 = vld [vmem:[#allocation2 + $0x30] sm:$0xff] }
 0x1b8   :  { %1777 = vmatprep.mubr.msk.bf16.mxu0 %vm70_vm0, %v290_v15 }
 0x1b9   :  { %1778 = vmatmul.mubr.msk.bf16.vlgmr.msra.gmra.mxu0 %vm70_vm0, %v291_v20  ;;  %v286_v22 = vld [vmem:[#allocation2 + $0x20] sm:$0xff] }
 0x1ba   :  { %1802 = vmatpush3.bf16.msra.mxu0 %v2160_v52 }
 0x1bb   :  { %v289_v21 = vld [vmem:[#allocation2 + $0x38] sm:$0xff]  ;;  %1803 = vmatprep.subr.bf16.mxu0 %v2019_v53 }
 0x1bc   :  { %v293_v26 = vpack.c.bf16 %v289_v21, %v288_v25 }
 0x1bd   :  { %v287_v23 = vld [vmem:[#allocation2 + $0x28] sm:$0xff] }
 0x1be   :  { %v292_v24 = vpack.c.bf16 %v287_v23, %v286_v22  ;;  %1804 = vmatpush3.bf16.msra.mxu0 %v2169_v54 }
 0x1bf   :  { %1817 = vmatprep.subr.bf16.mxu0 %v2019_v53 }
 0x1c0   :  { %1781 = vmatprep.mubr.msk.bf16.mxu0 %vm70_vm0, %v292_v24 }
 0x1c1   :  { %1782 = vmatmul.mubr.msk.bf16.gmra.mxu0 %vm70_vm0, %v293_v26 }
 0x1c2   :  { %1805 = vmatprep.mubr.msk.bf16.mxu0 %vm2020_vm4, %v2019_v53 }
 0x279   :  { %v1779_v31 = vpop.f32.mrf.mxu0 }
 0x27a   :  { %v2130_v32 = vadd.f32 %v1779_v31, %v2123_v29 }
 0x27b   :  { %v356_v16 = vpop.f32.mrf.mxu0 }
 0x27c   :  { %v357_v35 = vadd.f32 %v356_v16, %v2123_v29 }
 0x27d   :  { %v1780_v36 = vpop.f32.mrf.mxu0 }
 0x27e   :  { %v396_v37 = vmul.f32 %v357_v35, %v2134_v34  ;;  %v2139_v38 = vadd.f32 %v1780_v36, %v2123_v29 }
 0x27f   :  { %v359_v39 = vpop.f32.mrf.mxu0 }
 0x280   :  { %1928 = vtanh.f32 %v396_v37  ;;  %v360_v60 = vadd.f32 %v359_v39, %v2123_v29 }
 0x281   :  { %v1783_v40 = vpop.f32.mrf.mxu0 }
 0x282   :  { %v2142_v41 = vadd.f32 %v1783_v40, %v2123_v29 }
 0x283   :  { %v372_v42 = vpop.f32.mrf.mxu0 }
 0x284   :  { %v2145_v43 = vadd.f32 %v372_v42, %v2123_v29 }
 0x285   :  { %v1784_v44 = vpop.f32.mrf.mxu0 }
 0x286   :  { %v2148_v45 = vadd.f32 %v1784_v44, %v2123_v29 }
 0x287   :  { %v375_v42 = vpop.f32.mrf.mxu0 }
 0x28d   :  { %v1929_v46 = vpop.eup %1928 }
 0x28e   :  { %v398_v48 = vmul.f32 %v1929_v46, %v2134_v34 }
 0x290   :  { %v399_v49 = vadd.f32 %v398_v48, %v2152_v47 }
 0x292   :  { %401 = vrot.lane.b32.xlu0 %v399_v49, %s2018_s20 }
 0x304   :  { %v402_v50 = vpop.permute.xlu0 %401 }
 0x305   :  { %v404_v51 = vmul.f32 %v402_v50, %v399_v49 }
 0x307   :  { %1930 = vtanh.f32 %v404_v51 }
 0x314   :  { %v1931_v55 = vpop.eup %1930 }
 0x315   :  { %407 = vrot.lane.b32.xlu1 %v1931_v55, %s2016_s0 }
 0x387   :  { %v408_v56 = vpop.permute.xlu1 %407 }
 0x388   :  { %v2182_v57 = vmul.f32 %v408_v56, %v399_v49 }
 0x38a   :  { %v417_v58 = vpack.c.bf16 %v2182_v57, %v2182_v57 }
 0x38c   :  { %419 = vrot.lane.b32.xlu1 %v417_v58, %s2021_s25 }
 0x390   :  { %482 = vrot.lane.b32.xlu1 %v404_v51, %s2021_s25 }
 0x3fe   :  { %v420_v59 = vpop.permute.xlu1 %419 }
 0x3ff   :  { %1790 = vmatmul.mubr.msk.bf16.vlgmr.msra.gmra.mxu1 %vm70_vm0, %v420_v59 }
 0x400   :  { %1794 = vmatpush3.bf16.msra.mxu1 %v2160_v52  ;;  %1797 = vmatprep.mubr.msk.bf16.mxu1 %vm2020_vm4, %v2019_v53 }
 0x401   :  { %1795 = vmatprep.subr.bf16.mxu1 %v2019_v53 }
 0x402   :  { %v483_v8 = vpop.permute.xlu1 %482 }
 0x404   :  { %1796 = vmatpush3.bf16.msra.mxu1 %v2169_v54 }
 0x405   :  { %1809 = vmatprep.subr.bf16.mxu1 %v2019_v53 }
 0x4bf   :  { %v470_v61 = vpop.f32.mrf.mxu1 }
 0x4c0   :  { %v476_v62 = vadd.f32 %v470_v61, %v360_v60 }
 0x4c1   :  { %v1791_v63 = vpop.f32.mrf.mxu1 }
 0x4c2   :  { %v477_v0 = vmul.f32 %v476_v62, %v2134_v34 }
 0x4c3   :  { %v473_v1 = vpop.f32.mrf.mxu1 }
 0x4c4   :  { %1932 = vtanh.f32 %v477_v0 }
 0x4c5   :  { %v1792_v2 = vpop.f32.mrf.mxu1 }
 0x4d1   :  { %v1933_v3 = vpop.eup %1932 }
 0x4d2   :  { %v479_v4 = vmul.f32 %v1933_v3, %v2134_v34 }
 0x4d4   :  { %v480_v5 = vadd.f32 %v479_v4, %v2152_v47 }
 0x4d6   :  { %487 = vrot.lane.b32.xlu0 %v480_v5, %s2018_s20  ;;  %v485_v9 = vmul.f32 %v483_v8, %v480_v5 }
 0x548   :  { %v488_v6 = vpop.permute.xlu0 %487 }
 0x549   :  { %v490_v7 = vmul.f32 %v488_v6, %v480_v5 }
 0x54b   :  { %492 = vrot.lane.b32.xlu0 %v490_v7, %s2021_s25 }
 0x5bd   :  { %v493_v10 = vpop.permute.xlu0 %492 }
 0x5be   :  { %v495_v11 = vadd.f32 %v493_v10, %v485_v9 }
 0x5c0   :  { %1934 = vtanh.f32 %v495_v11 }
 0x5cd   :  { %v1935_v12 = vpop.eup %1934 }
 0x5ce   :  { %498 = vrot.lane.b32.xlu1 %v1935_v12, %s2018_s20 }
 0x640   :  { %v499_v13 = vpop.permute.xlu1 %498 }
 0x641   :  { %v2202_v14 = vmul.f32 %v499_v13, %v480_v5 }
 0x643   :  { %v508_v15 = vpack.c.bf16 %v2202_v14, %v2202_v14 }
 0x645   :  { %510 = vrot.lane.b32.xlu0 %v508_v15, %s2021_s25 }
 0x6b7   :  { %v511_v18 = vpop.permute.xlu0 %510 }
 0x6b8   :  { %1798 = vmatmul.mubr.msk.bf16.vlgmr.msra.gmra.mxu1 %vm70_vm0, %v511_v18 }
 0x6b9   :  { %1810 = vmatpush3.bf16.msra.mxu1 %v2160_v52  ;;  %1813 = vmatprep.mubr.msk.bf16.mxu1 %vm2020_vm4, %v2019_v53 }
 0x6ba   :  { %1811 = vmatprep.subr.bf16.mxu1 %v2019_v53 }
 0x6bd   :  { %1812 = vmatpush3.bf16.msra.mxu1 %v2169_v54 }
 0x6be   :  { %1825 = vmatprep.subr.bf16.mxu1 %v2019_v53 }
 0x778   :  { %v549_v20 = vpop.f32.mrf.mxu1 }
 0x779   :  { %v555_v21 = vadd.f32 %v549_v20, %v2130_v32 }
 0x77a   :  { %v1799_v22 = vpop.f32.mrf.mxu1 }
 0x77b   :  { %v556_v23 = vmul.f32 %v555_v21, %v2134_v34 }
 0x77c   :  { %v552_v24 = vpop.f32.mrf.mxu1 }
 0x77d   :  { %1936 = vtanh.f32 %v556_v23 }
 0x77e   :  { %v1800_v25 = vpop.f32.mrf.mxu1 }
 0x78a   :  { %v1937_v26 = vpop.eup %1936 }
 0x78b   :  { %v558_v27 = vmul.f32 %v1937_v26, %v2134_v34  ;;  %v376_v26 = vadd.f32 %v375_v42, %v2123_v29 }
 0x78d   :  { %v559_v28 = vadd.f32 %v558_v27, %v2152_v47 }
 0x78f   :  { %562 = vrot.lane.b32.xlu1 %v559_v28, %s2018_s20  ;;  %v560_v33 = vmul.f32 %v559_v28, %v495_v11 }
 0x801   :  { %v563_v30 = vpop.permute.xlu1 %562 }
 0x802   :  { %v565_v31 = vmul.f32 %v563_v30, %v559_v28 }
 0x804   :  { %567 = vrot.lane.b32.xlu0 %v565_v31, %s2021_s25 }
 0x876   :  { %v568_v16 = vpop.permute.xlu0 %567 }
 0x877   :  { %v570_v32 = vadd.f32 %v568_v16, %v560_v33 }
 0x879   :  { %1938 = vtanh.f32 %v570_v32 }
 0x886   :  { %v1939_v35 = vpop.eup %1938 }
 0x887   :  { %573 = vrot.lane.b32.xlu1 %v1939_v35, %s2018_s20 }
 0x8f9   :  { %v574_v36 = vpop.permute.xlu1 %573 }
 0x8fa   :  { %v2221_v37 = vmul.f32 %v574_v36, %v559_v28 }
 0x8fc   :  { %v583_v39 = vpack.c.bf16 %v2221_v37, %v2221_v37 }
 0x8fe   :  { %585 = vrot.lane.b32.xlu0 %v583_v39, %s2021_s25 }
 0x970   :  { %v586_v40 = vpop.permute.xlu0 %585 }
 0x971   :  { %1806 = vmatmul.mubr.msk.bf16.vlgmr.msra.gmra.mxu0 %vm70_vm0, %v586_v40 }
 0x972   :  { %1818 = vmatpush3.bf16.msra.mxu0 %v2160_v52  ;;  %1821 = vmatprep.mubr.msk.bf16.mxu0 %vm2020_vm4, %v2019_v53 }
 0x973   :  { %1819 = vmatprep.subr.bf16.mxu0 %v2019_v53 }
 0x976   :  { %1820 = vmatpush3.bf16.msra.mxu0 %v2169_v54 }
 0x977   :  { %1833 = vmatprep.subr.bf16.mxu0 %v2019_v53 }
 0xa31   :  { %v624_v44 = vpop.f32.mrf.mxu0 }
 0xa32   :  { %v630_v46 = vadd.f32 %v624_v44, %v2139_v38 }
 0xa33   :  { %v1807_v48 = vpop.f32.mrf.mxu0 }
 0xa34   :  { %v631_v49 = vmul.f32 %v630_v46, %v2134_v34  ;;  %v1924_v46 = vld [vmem:[%s2494_s2 + $0x28] sm:$0xff]  }
 0xa35   :  { %v627_v50 = vpop.f32.mrf.mxu0 }
 0xa36   :  { %1940 = vtanh.f32 %v631_v49 }
 0xa37   :  { %v1808_v51 = vpop.f32.mrf.mxu0 }
 0xa43   :  { %v1941_v55 = vpop.eup %1940 }
 0xa44   :  { %v633_v56 = vmul.f32 %v1941_v55, %v2134_v34 }
 0xa46   :  { %v634_v58 = vadd.f32 %v633_v56, %v2152_v47 }
 0xa48   :  { %637 = vrot.lane.b32.xlu1 %v634_v58, %s2018_s20  ;;  %v635_v61 = vmul.f32 %v634_v58, %v570_v32 }
 0xaba   :  { %v638_v59 = vpop.permute.xlu1 %637 }
 0xabb   :  { %v640_v60 = vmul.f32 %v638_v59, %v634_v58 }
 0xabd   :  { %642 = vrot.lane.b32.xlu0 %v640_v60, %s2021_s25 }
 0xb2f   :  { %v643_v62 = vpop.permute.xlu0 %642 }
 0xb30   :  { %v645_v38 = vadd.f32 %v643_v62, %v635_v61 }
 0xb32   :  { %1942 = vtanh.f32 %v645_v38 }
 0xb3f   :  { %v1943_v63 = vpop.eup %1942 }
 0xb40   :  { %648 = vrot.lane.b32.xlu1 %v1943_v63, %s2018_s20 }
 0xbb2   :  { %v649_v0 = vpop.permute.xlu1 %648 }
 0xbb3   :  { %v2240_v1 = vmul.f32 %v649_v0, %v634_v58 }
 0xbb5   :  { %v658_v2 = vpack.c.bf16 %v2240_v1, %v2240_v1 }
 0xbb7   :  { %660 = vrot.lane.b32.xlu0 %v658_v2, %s2021_s25 }
 0xc29   :  { %v661_v3 = vpop.permute.xlu0 %660 }
 0xc2a   :  { %1814 = vmatmul.mubr.msk.bf16.vlgmr.msra.gmra.mxu1 %vm70_vm0, %v661_v3 }
 0xc2b   :  { %1826 = vmatpush3.bf16.msra.mxu1 %v2160_v52  ;;  %1829 = vmatprep.mubr.msk.bf16.mxu1 %vm2020_vm4, %v2019_v53 }
 0xc2c   :  { %1827 = vmatprep.subr.bf16.mxu1 %v2019_v53 }
 0xc2f   :  { %1828 = vmatpush3.bf16.msra.mxu1 %v2169_v54 }
 0xc30   :  { %1841 = vmatprep.subr.bf16.mxu1 %v1924_v46 }
 0xcea   :  { %v699_v4 = vpop.f32.mrf.mxu1 }
 0xceb   :  { %v705_v5 = vadd.f32 %v699_v4, %v2145_v43  ;;  %v980_v4 = vsub.s32 2, %v2091_v17 }
 0xcec   :  { %v1815_v6 = vpop.f32.mrf.mxu1 }
 0xced   :  { %v706_v7 = vmul.f32 %v705_v5, %v2134_v34 }
 0xcee   :  { %v702_v8 = vpop.f32.mrf.mxu1 }
 0xcef   :  { %1944 = vtanh.f32 %v706_v7  ;;  %v2313_v7 = vrot.slane %v2094_v19, %v980_v4 }
 0xcf0   :  { %v1816_v9 = vpop.f32.mrf.mxu1 }
 0xcfc   :  { %v1945_v10 = vpop.eup %1944 }
 0xcfd   :  { %v708_v11 = vmul.f32 %v1945_v10, %v2134_v34 }
 0xcff   :  { %v709_v12 = vadd.f32 %v708_v11, %v2152_v47 }
 0xd01   :  { %712 = vrot.lane.b32.xlu1 %v709_v12, %s2018_s20  ;;  %v710_v18 = vmul.f32 %v709_v12, %v645_v38 }
 0xd73   :  { %v713_v13 = vpop.permute.xlu1 %712 }
 0xd74   :  { %v715_v15 = vmul.f32 %v713_v13, %v709_v12 }
 0xd76   :  { %717 = vrot.lane.b32.xlu0 %v715_v15, %s2021_s25 }
 0xde8   :  { %v718_v20 = vpop.permute.xlu0 %717 }
 0xde9   :  { %v720_v43 = vadd.f32 %v718_v20, %v710_v18 }
 0xdeb   :  { %1946 = vtanh.f32 %v720_v43 }
 0xdf8   :  { %v1947_v21 = vpop.eup %1946 }
 0xdf9   :  { %723 = vrot.lane.b32.xlu1 %v1947_v21, %s2018_s20 }
 0xe6b   :  { %v724_v22 = vpop.permute.xlu1 %723 }
 0xe6c   :  { %v2258_v23 = vmul.f32 %v724_v22, %v709_v12 }
 0xe6e   :  { %v733_v24 = vpack.c.bf16 %v2258_v23, %v2258_v23 }
 0xe70   :  { %735 = vrot.lane.b32.xlu0 %v733_v24, %s2021_s25 }
 0xee2   :  { %v736_v25 = vpop.permute.xlu0 %735 }
 0xee3   :  { %1822 = vmatmul.mubr.msk.bf16.vlgmr.msra.gmra.mxu0 %vm70_vm0, %v736_v25 }
 0xee4   :  { %1834 = vmatpush3.bf16.msra.mxu0 %v2160_v52  ;;  %1837 = vmatprep.mubr.msk.bf16.mxu0 %vm2020_vm4, %v2019_v53 }
 0xee5   :  { %1835 = vmatprep.subr.bf16.mxu0 %v2019_v53 }
 0xee8   :  { %1836 = vmatpush3.bf16.msra.mxu0 %v2169_v54 }
 0xee9   :  { %1853 = vmatprep.subr.bf16.mxu0 %v2019_v53 }
 0xfa3   :  { %v774_v27 = vpop.f32.mrf.mxu0 }
 0xfa4   :  { %v780_v28 = vadd.f32 %v774_v27, %v376_v26 }
 0xfa5   :  { %v1823_v30 = vpop.f32.mrf.mxu0 }
 0xfa6   :  { %v781_v31 = vmul.f32 %v780_v28, %v2134_v34 }
 0xfa7   :  { %v777_v33 = vpop.f32.mrf.mxu0 }
 0xfa8   :  { %1948 = vtanh.f32 %v781_v31  ;;  %v2335_v31 = vld [vmem:[%s2494_s2 + $0x38] sm:$0xff]   ;;  %v2342_v33 = vld [vmem:[%s2494_s2 + $0x30] sm:$0xff]  }
 0xfa9   :  { %v1824_v16 = vpop.f32.mrf.mxu0 }
 0xfb5   :  { %v1949_v52 = vpop.eup %1948 }
 0xfb6   :  { %v783_v32 = vmul.f32 %v1949_v52, %v2134_v34 }
 0xfb8   :  { %v784_v35 = vadd.f32 %v783_v32, %v2152_v47 }
 0xfba   :  { %787 = vrot.lane.b32.xlu1 %v784_v35, %s2018_s20  ;;  %v785_v29 = vmul.f32 %v784_v35, %v720_v43 }
0x102c   :  { %v788_v54 = vpop.permute.xlu1 %787 }
0x102d   :  { %v790_v36 = vmul.f32 %v788_v54, %v784_v35 }
0x102f   :  { %792 = vrot.lane.b32.xlu0 %v790_v36, %s2021_s25 }
0x10a1   :  { %v793_v39 = vpop.permute.xlu0 %792 }
0x10a2   :  { %v2276_v40 = vadd.f32 %v793_v39, %v785_v29 }
0x10a4   :  { %1950 = vtanh.f32 %v2276_v40 }
0x10b1   :  { %v1951_v42 = vpop.eup %1950 }
0x10b2   :  { %798 = vrot.lane.b32.xlu1 %v1951_v42, %s2018_s20 }
0x10b6   :  { %412 = vrot.lane.b32.xlu1 %v2182_v57, %s2021_s25 }
0x10ba   :  { %578 = vrot.lane.b32.xlu1 %v2221_v37, %s2021_s25  ;;  %v1925_v37 = vld [vmem:[%s2494_s2 + $0x20] sm:$0xff]  }
0x1124   :  { %v799_v44 = vpop.permute.xlu1 %798 }
0x1125   :  { %v2287_v48 = vmul.f32 %v799_v44, %v784_v35 }
0x1127   :  { %v808_v49 = vpack.c.bf16 %v2287_v48, %v2287_v48 }
0x1128   :  { %v413_v50 = vpop.permute.xlu1 %412 }
0x1129   :  { %415 = vst.msk [vmem:[#allocation2] sm:$0xff] %vm70_vm0, %v413_v50  ;;  %810 = vrot.lane.b32.xlu0 %v808_v49, %s2021_s25 }
0x112c   :  { %v579_v57 = vpop.permute.xlu1 %578 }
0x112d   :  { %581 = vst.msk [vmem:[#allocation2 + $0x10] sm:$0xff] %vm70_vm0, %v579_v57  ;;  %503 = vrot.lane.b32.xlu0 %v2202_v14, %s2021_s25 }
0x1130   :  { %v966_v14 = vld [vmem:[#allocation2] sm:$0xff] }
0x1131   :  { %653 = vrot.lane.b32.xlu0 %v2240_v1, %s2021_s25 }
0x1134   :  { %v968_v60 = vld [vmem:[#allocation2 + $0x10] sm:$0xff] }
0x119b   :  { %v811_v51 = vpop.permute.xlu0 %810 }
0x119c   :  { %1830 = vmatmul.mubr.msk.bf16.vlgmr.msra.gmra.mxu1 %vm70_vm0, %v811_v51 }
0x119d   :  { %1842 = vmatpush3.bf16.msra.mxu1 %v1924_v46 }
0x119e   :  { %1843 = vmatprep.subr.bf16.mxu1 %v1925_v37 }
0x119f   :  { %v504_v55 = vpop.permute.xlu0 %503 }
0x11a0   :  { %506 = vst.msk [vmem:[#allocation2 + $0x8] sm:$0xff] %vm70_vm0, %v504_v55 }
0x11a1   :  { %1844 = vmatpush3.bf16.msra.mxu1 %v1925_v37 }
0x11a2   :  { %1869 = vmatprep.subr.bf16.mxu1 %v2019_v53 }
0x11a3   :  { %v654_v56 = vpop.permute.xlu0 %653 }
0x11a4   :  { %656 = vst.msk [vmem:[#allocation2 + $0x18] sm:$0xff] %vm70_vm0, %v654_v56 }
0x11a7   :  { %v967_v58 = vld [vmem:[#allocation2 + $0x8] sm:$0xff] }
0x11a8   :  { %v974_v59 = vpack.c.bf16 %v967_v58, %v966_v14 }
0x11aa   :  { %1845 = vmatprep.mubr.msk.bf16.mxu1 %vm70_vm0, %v974_v59 }
0x11ab   :  { %v969_v61 = vld [vmem:[#allocation2 + $0x18] sm:$0xff] }
0x11ac   :  { %v975_v62 = vpack.c.bf16 %v969_v61, %v968_v60 }
0x11ae   :  { %1846 = vmatmul.mubr.msk.bf16.vlgmr.msra.gmra.mxu1 %vm70_vm0, %v975_v62 }
0x11af   :  { %1870 = vmatpush3.bf16.msra.mxu1 %v2335_v31 }
0x11b0   :  { %1871 = vmatprep.subr.bf16.mxu1 %v2019_v53 }
0x11b3   :  { %1872 = vmatpush3.bf16.msra.mxu1 %v2342_v33 }
0x11b4   :  { %1885 = vmatprep.subr.bf16.mxu1 %v2019_v53 }
0x125c   :  { %v849_v38 = vpop.f32.mrf.mxu1 }
0x125d   :  { %v855_v63 = vadd.f32 %v849_v38, %v2142_v41 }
0x125e   :  { %v1831_v0 = vpop.f32.mrf.mxu1 }
0x125f   :  { %v856_v1 = vmul.f32 %v855_v63, %v2134_v34 }
0x1260   :  { %v852_v2 = vpop.f32.mrf.mxu1 }
0x1261   :  { %1952 = vtanh.f32 %v856_v1 }
0x1262   :  { %v1832_v3 = vpop.f32.mrf.mxu1 }
0x126e   :  { %v1953_v5 = vpop.eup %1952  ;;  %v2310_v6 = vpop.f32.mrf.mxu1 }
0x126f   :  { %v858_v8 = vmul.f32 %v1953_v5, %v2134_v34 }
0x1270   :  { %v1040_v9 = vpop.f32.mrf.mxu1 }
0x1271   :  { %v1041_v10 = vadd.f32 %v1040_v9, %v2313_v7  ;;  %v859_v41 = vadd.f32 %v858_v8, %v2152_v47 }
0x1272   :  { %v2365_v36 = vpop.f32.mrf.mxu1 }
0x1273   :  { %v1080_v11 = vmul.f32 %v1041_v10, %v2134_v34  ;;  %862 = vrot.lane.b32.xlu1 %v859_v41, %s2018_s20  ;;  %v860_v22 = vmul.f32 %v859_v41, %v2276_v40 }
0x1274   :  { %v1043_v42 = vpop.f32.mrf.mxu1 }
0x1275   :  { %1954 = vtanh.f32 %v1080_v11  ;;  %v1044_v49 = vadd.f32 %v1043_v42, %v2313_v7 }
0x1282   :  { %v1955_v12 = vpop.eup %1954 }
0x1283   :  { %v1082_v13 = vmul.f32 %v1955_v12, %v2134_v34 }
0x1285   :  { %v1083_v15 = vadd.f32 %v1082_v13, %v2152_v47 }
0x1287   :  { %1085 = vrot.lane.b32.xlu1 %v1083_v15, %s2018_s20 }
0x12e5   :  { %v863_v19 = vpop.permute.xlu1 %862 }
0x12e6   :  { %v865_v18 = vmul.f32 %v863_v19, %v859_v41 }
0x12e8   :  { %867 = vrot.lane.b32.xlu0 %v865_v18, %s2021_s25 }
0x12f9   :  { %v1086_v20 = vpop.permute.xlu1 %1085 }
0x12fa   :  { %v1088_v43 = vmul.f32 %v1086_v20, %v1083_v15 }
0x12fc   :  { %1956 = vtanh.f32 %v1088_v43 }
0x1309   :  { %v1957_v21 = vpop.eup %1956 }
0x130a   :  { %1091 = vrot.lane.b32.xlu1 %v1957_v21, %s2016_s0  ;;  %v1049_v21 = vadd.f32 %v2310_v6, %v2313_v7 }
0x135a   :  { %v868_v24 = vpop.permute.xlu0 %867 }
0x135b   :  { %v2326_v25 = vadd.f32 %v868_v24, %v860_v22 }
0x135d   :  { %1958 = vtanh.f32 %v2326_v25 }
0x136a   :  { %v1959_v26 = vpop.eup %1958 }
0x136b   :  { %873 = vrot.lane.b32.xlu0 %v1959_v26, %s2018_s20 }
0x137c   :  { %v1092_v27 = vpop.permute.xlu1 %1091 }
0x137d   :  { %v1094_v28 = vmul.f32 %v1092_v27, %v1083_v15 }
0x137f   :  { %v1096_v30 = vpack.c.bf16 %v1094_v28, %v1094_v28 }
0x1381   :  { %1098 = vrot.lane.b32.xlu1 %v1096_v30, %s2021_s25 }
0x1385   :  { %1161 = vrot.lane.b32.xlu1 %v1088_v43, %s2021_s25 }
0x13dd   :  { %v874_v16 = vpop.permute.xlu0 %873 }
0x13de   :  { %v2346_v52 = vmul.f32 %v874_v16, %v859_v41 }
0x13e0   :  { %v883_v32 = vpack.c.bf16 %v2346_v52, %v2346_v52 }
0x13e2   :  { %885 = vrot.lane.b32.xlu0 %v883_v32, %s2021_s25 }
0x13f3   :  { %v1099_v54 = vpop.permute.xlu1 %1098 }
0x13f7   :  { %v1162_v62 = vpop.permute.xlu1 %1161 }
0x1454   :  { %v886_v35 = vpop.permute.xlu0 %885 }
0x1455   :  { %1838 = vmatmul.mubr.msk.bf16.vlgmr.msra.gmra.mxu0 %vm70_vm0, %v886_v35 }
0x1456   :  { %1854 = vmatpush3.bf16.msra.mxu0 %v2335_v31  ;;  %1857 = vmatprep.mubr.msk.bf16.mxu0 %vm2020_vm4, %v2019_v53 }
0x1457   :  { %1855 = vmatprep.subr.bf16.mxu0 %v2019_v53 }
0x145a   :  { %1856 = vmatpush3.bf16.msra.mxu0 %v2342_v33 }
0x145b   :  { %1861 = vmatprep.subr.bf16.mxu0 %v2019_v53 }
0x145d   :  { %1858 = vmatmul.mubr.msk.bf16.vlgmr.msra.gmra.mxu0 %vm70_vm0, %v1099_v54 }
0x145e   :  { %1862 = vmatpush3.bf16.msra.mxu0 %v2335_v31  ;;  %1865 = vmatprep.mubr.msk.bf16.mxu0 %vm2020_vm4, %v2019_v53 }
0x145f   :  { %1863 = vmatprep.subr.bf16.mxu0 %v2019_v53 }
0x1462   :  { %1864 = vmatpush3.bf16.msra.mxu0 %v2342_v33 }
0x1463   :  { %1877 = vmatprep.subr.bf16.mxu0 %v2019_v53 }
0x1515   :  { %v924_v29 = vpop.f32.mrf.mxu0 }
0x1516   :  { %v930_v39 = vadd.f32 %v924_v29, %v2148_v45 }
0x1517   :  { %v1839_v40 = vpop.f32.mrf.mxu0 }
0x1518   :  { %v931_v61 = vmul.f32 %v930_v39, %v2134_v34 }
0x1519   :  { %v927_v44 = vpop.f32.mrf.mxu0 }
0x151b   :  { %v1840_v46 = vpop.f32.mrf.mxu0 }
0x151d   :  { %v1149_v50 = vpop.f32.mrf.mxu0 }
0x151e   :  { %v1155_v57 = vadd.f32 %v1149_v50, %v1044_v49 }
0x151f   :  { %v1859_v37 = vpop.f32.mrf.mxu0 }
0x1520   :  { %v1156_v51 = vmul.f32 %v1155_v57, %v2134_v34 }
0x1521   :  { %v1152_v55 = vpop.f32.mrf.mxu0 }
0x1522   :  { %1960 = vtanh.f32 %v1156_v51 }
0x1523   :  { %v1860_v56 = vpop.f32.mrf.mxu0  ;;  %1962 = vtanh.f32 %v931_v61 }
0x152f   :  { %v1961_v14 = vpop.eup %1960 }
0x1530   :  { %v1158_v58 = vmul.f32 %v1961_v14, %v2134_v34  ;;  %v1963_v1 = vpop.eup %1962 }
0x1531   :  { %v933_v2 = vmul.f32 %v1963_v1, %v2134_v34 }
0x1532   :  { %v1159_v59 = vadd.f32 %v1158_v58, %v2152_v47 }
0x1533   :  { %v934_v4 = vadd.f32 %v933_v2, %v2152_v47 }
0x1534   :  { %1166 = vrot.lane.b32.xlu0 %v1159_v59, %s2018_s20  ;;  %v1164_v38 = vmul.f32 %v1162_v62, %v1159_v59 }
0x1535   :  { %v935_v12 = vmul.f32 %v934_v4, %v2326_v25 }
0x15a6   :  { %v1167_v45 = vpop.permute.xlu0 %1166 }
0x15a7   :  { %v1169_v60 = vmul.f32 %v1167_v45, %v1159_v59 }
0x15a9   :  { %1171 = vrot.lane.b32.xlu0 %v1169_v60, %s2021_s25  ;;  %v1052_v60 = vadd.f32 %v2365_v36, %v2313_v7 }
0x161b   :  { %v1172_v63 = vpop.permute.xlu0 %1171 }
0x161c   :  { %v1174_v0 = vadd.f32 %v1172_v63, %v1164_v38 }
0x161e   :  { %1964 = vtanh.f32 %v1174_v0 }
0x162b   :  { %v1965_v3 = vpop.eup %1964 }
0x162c   :  { %1177 = vrot.lane.b32.xlu1 %v1965_v3, %s2018_s20 }
0x1630   :  { %937 = vrot.lane.b32.xlu1 %v934_v4, %s2018_s20 }
0x169e   :  { %v1178_v5 = vpop.permute.xlu1 %1177 }
0x169f   :  { %v1180_v8 = vmul.f32 %v1178_v5, %v1159_v59 }
0x16a1   :  { %v1182_v9 = vpack.c.bf16 %v1180_v8, %v1180_v8 }
0x16a2   :  { %v938_v10 = vpop.permute.xlu1 %937 }
0x16a3   :  { %v940_v41 = vmul.f32 %v938_v10, %v934_v4  ;;  %1184 = vrot.lane.b32.xlu0 %v1182_v9, %s2021_s25 }
0x16a5   :  { %942 = vrot.lane.b32.xlu1 %v940_v41, %s2021_s25 }
0x1715   :  { %v1185_v11 = vpop.permute.xlu0 %1184 }
0x1716   :  { %1866 = vmatmul.mubr.msk.bf16.vlgmr.msra.gmra.mxu0 %vm70_vm0, %v1185_v11 }
0x1717   :  { %v943_v13 = vpop.permute.xlu1 %942  ;;  %1878 = vmatpush3.bf16.msra.mxu0 %v2335_v31  ;;  %1881 = vmatprep.mubr.msk.bf16.mxu0 %vm2020_vm4, %v2019_v53 }
0x1718   :  { %v945_v15 = vadd.f32 %v943_v13, %v935_v12  ;;  %1879 = vmatprep.subr.bf16.mxu0 %v2019_v53 }
0x171a   :  { %1966 = vtanh.f32 %v945_v15 }
0x171b   :  { %1880 = vmatpush3.bf16.msra.mxu0 %v2342_v33 }
0x171c   :  { %1893 = vmatprep.subr.bf16.mxu0 %v2019_v53 }
0x1727   :  { %v1967_v19 = vpop.eup %1966 }
0x1728   :  { %948 = vrot.lane.b32.xlu1 %v1967_v19, %s2018_s20 }
0x172c   :  { %728 = vrot.lane.b32.xlu1 %v2258_v23, %s2021_s25 }
0x1730   :  { %878 = vrot.lane.b32.xlu1 %v2346_v52, %s2021_s25 }
0x179a   :  { %v949_v18 = vpop.permute.xlu1 %948 }
0x179b   :  { %v951_v39 = vmul.f32 %v949_v18, %v934_v4 }
0x179e   :  { %v729_v20 = vpop.permute.xlu1 %728 }
0x179f   :  { %731 = vst.msk [vmem:[#allocation2 + $0x20] sm:$0xff] %vm70_vm0, %v729_v20 }
0x17a2   :  { %v879_v43 = vpop.permute.xlu1 %878 }
0x17a3   :  { %881 = vst.msk [vmem:[#allocation2 + $0x30] sm:$0xff] %vm70_vm0, %v879_v43 }
0x17a6   :  { %v970_v50 = vld [vmem:[#allocation2 + $0x20] sm:$0xff] }
0x17d6   :  { %v1223_v22 = vpop.f32.mrf.mxu0 }
0x17d7   :  { %v1229_v24 = vadd.f32 %v1223_v22, %v1049_v21 }
0x17d8   :  { %v1867_v25 = vpop.f32.mrf.mxu0 }
0x17d9   :  { %v1230_v26 = vmul.f32 %v1229_v24, %v2134_v34 }
0x17da   :  { %v1226_v27 = vpop.f32.mrf.mxu0 }
0x17db   :  { %1968 = vtanh.f32 %v1230_v26 }
0x17dc   :  { %v1868_v23 = vpop.f32.mrf.mxu0 }
0x17e8   :  { %v1969_v28 = vpop.eup %1968 }
0x17e9   :  { %v1232_v30 = vmul.f32 %v1969_v28, %v2134_v34 }
0x17eb   :  { %v1233_v16 = vadd.f32 %v1232_v30, %v2152_v47 }
0x17ed   :  { %1236 = vrot.lane.b32.xlu0 %v1233_v16, %s2018_s20  ;;  %v1234_v6 = vmul.f32 %v1233_v16, %v1174_v0 }
0x185f   :  { %v1237_v52 = vpop.permute.xlu0 %1236 }
0x1860   :  { %v1239_v32 = vmul.f32 %v1237_v52, %v1233_v16 }
0x1862   :  { %1241 = vrot.lane.b32.xlu0 %v1239_v32, %s2021_s25 }
0x18d4   :  { %v1242_v35 = vpop.permute.xlu0 %1241 }
0x18d5   :  { %v1244_v54 = vadd.f32 %v1242_v35, %v1234_v6 }
0x18d7   :  { %1970 = vtanh.f32 %v1244_v54 }
0x18e4   :  { %v1971_v29 = vpop.eup %1970 }
0x18e5   :  { %1247 = vrot.lane.b32.xlu0 %v1971_v29, %s2018_s20 }
0x18e9   :  { %803 = vrot.lane.b32.xlu0 %v2287_v48, %s2021_s25  ;;  %v972_v48 = vld [vmem:[#allocation2 + $0x30] sm:$0xff] }
0x18ed   :  { %953 = vrot.lane.b32.xlu0 %v951_v39, %s2021_s25 }
0x1957   :  { %v1248_v40 = vpop.permute.xlu0 %1247 }
0x1958   :  { %v1250_v42 = vmul.f32 %v1248_v40, %v1233_v16 }
0x195a   :  { %v1252_v44 = vpack.c.bf16 %v1250_v42, %v1250_v42 }
0x195b   :  { %v804_v46 = vpop.permute.xlu0 %803 }
0x195c   :  { %806 = vst.msk [vmem:[#allocation2 + $0x28] sm:$0xff] %vm70_vm0, %v804_v46  ;;  %1254 = vrot.lane.b32.xlu1 %v1252_v44, %s2021_s25 }
0x195f   :  { %v954_v49 = vpop.permute.xlu0 %953 }
0x1960   :  { %956 = vst.msk [vmem:[#allocation2 + $0x38] sm:$0xff] %vm70_vm0, %v954_v49 }
0x1963   :  { %v971_v57 = vld [vmem:[#allocation2 + $0x28] sm:$0xff] }
0x1964   :  { %v976_v37 = vpack.c.bf16 %v971_v57, %v970_v50 }
0x1966   :  { %1849 = vmatprep.mubr.msk.bf16.mxu1 %vm70_vm0, %v976_v37 }
0x1967   :  { %v973_v51 = vld [vmem:[#allocation2 + $0x38] sm:$0xff] }
0x1968   :  { %v977_v55 = vpack.c.bf16 %v973_v51, %v972_v48 }
0x196a   :  { %1850 = vmatmul.mubr.msk.bf16.gmra.mxu1 %vm70_vm0, %v977_v55 }
0x196b   :  { %1873 = vmatprep.mubr.msk.bf16.mxu1 %vm2020_vm4, %v2019_v53 }
0x19ce   :  { %v1255_v56 = vpop.permute.xlu1 %1254 }
0x19cf   :  { %1874 = vmatmul.mubr.msk.bf16.vlgmr.msra.gmra.mxu1 %vm70_vm0, %v1255_v56 }
0x19d0   :  { %1886 = vmatpush3.bf16.msra.mxu1 %v2335_v31  ;;  %1889 = vmatprep.mubr.msk.bf16.mxu1 %vm2020_vm4, %v2019_v53 }
0x19d1   :  { %1887 = vmatprep.subr.bf16.mxu1 %v2019_v53 }
0x19d4   :  { %1888 = vmatpush3.bf16.msra.mxu1 %v2342_v33 }
0x19d5   :  { %1901 = vmatprep.subr.bf16.mxu1 %v2019_v53 }
0x1a2a   :  { %v2421_v14 = vpop.f32.mrf.mxu1 }
0x1a2c   :  { %v1056_v58 = vpop.f32.mrf.mxu1 }
0x1a2d   :  { %v1057_v19 = vadd.f32 %v1056_v58, %v2313_v7 }
0x1a2e   :  { %v2423_v59 = vpop.f32.mrf.mxu1 }
0x1a30   :  { %v2425_v45 = vpop.f32.mrf.mxu1 }
0x1a31   :  { %v1060_v39 = vadd.f32 %v2425_v45, %v2313_v7 }
0x1a8f   :  { %v1293_v61 = vpop.f32.mrf.mxu1 }
0x1a90   :  { %v1299_v62 = vadd.f32 %v1293_v61, %v1052_v60 }
0x1a91   :  { %v1875_v38 = vpop.f32.mrf.mxu1 }
0x1a92   :  { %v1300_v63 = vmul.f32 %v1299_v62, %v2134_v34  ;;  %v1065_v62 = vadd.f32 %v2421_v14, %v2313_v7 }
0x1a93   :  { %v1296_v0 = vpop.f32.mrf.mxu1 }
0x1a94   :  { %1972 = vtanh.f32 %v1300_v63 }
0x1a95   :  { %v1876_v1 = vpop.f32.mrf.mxu1 }
0x1aa1   :  { %v1973_v2 = vpop.eup %1972 }
0x1aa2   :  { %v1302_v3 = vmul.f32 %v1973_v2, %v2134_v34 }
0x1aa4   :  { %v1303_v4 = vadd.f32 %v1302_v3, %v2152_v47 }
0x1aa6   :  { %1306 = vrot.lane.b32.xlu0 %v1303_v4, %s2018_s20  ;;  %v1304_v36 = vmul.f32 %v1303_v4, %v1244_v54 }
0x1b18   :  { %v1307_v5 = vpop.permute.xlu0 %1306 }
0x1b19   :  { %v1309_v8 = vmul.f32 %v1307_v5, %v1303_v4 }
0x1b1b   :  { %1311 = vrot.lane.b32.xlu1 %v1309_v8, %s2021_s25 }
0x1b8d   :  { %v1312_v9 = vpop.permute.xlu1 %1311 }
0x1b8e   :  { %v1314_v10 = vadd.f32 %v1312_v9, %v1304_v36 }
0x1b90   :  { %1974 = vtanh.f32 %v1314_v10 }
0x1b9d   :  { %v1975_v41 = vpop.eup %1974 }
0x1b9e   :  { %1317 = vrot.lane.b32.xlu0 %v1975_v41, %s2018_s20 }
0x1c10   :  { %v1318_v11 = vpop.permute.xlu0 %1317 }
0x1c11   :  { %v1320_v12 = vmul.f32 %v1318_v11, %v1303_v4 }
0x1c13   :  { %v1322_v13 = vpack.c.bf16 %v1320_v12, %v1320_v12 }
0x1c15   :  { %1324 = vrot.lane.b32.xlu1 %v1322_v13, %s2021_s25 }
0x1c87   :  { %v1325_v15 = vpop.permute.xlu1 %1324 }
0x1c88   :  { %1882 = vmatmul.mubr.msk.bf16.vlgmr.msra.gmra.mxu0 %vm70_vm0, %v1325_v15 }
0x1c89   :  { %1894 = vmatpush3.bf16.msra.mxu0 %v2335_v31  ;;  %1897 = vmatprep.mubr.msk.bf16.mxu0 %vm2020_vm4, %v2019_v53 }
0x1c8a   :  { %1895 = vmatprep.subr.bf16.mxu0 %v2019_v53 }
0x1c8d   :  { %1896 = vmatpush3.bf16.msra.mxu0 %v2342_v33 }
0x1d48   :  { %v1363_v18 = vpop.f32.mrf.mxu0 }
0x1d49   :  { %v1369_v20 = vadd.f32 %v1363_v18, %v1057_v19  ;;  %v1068_v18 = vadd.f32 %v2423_v59, %v2313_v7  ;;  %v1603_v7 = vsub.s32 3, %v2091_v17  ;;  %v1992_v59 = vld [vmem:[#allocation4] sm:$0x1f] }
0x1d4a   :  { %v1883_v43 = vpop.f32.mrf.mxu0 }
0x1d4b   :  { %v1370_v21 = vmul.f32 %v1369_v20, %v2134_v34 }
0x1d4c   :  { %v1366_v22 = vpop.f32.mrf.mxu0 }
0x1d4d   :  { %1976 = vtanh.f32 %v1370_v21 }
0x1d4e   :  { %v1884_v24 = vpop.f32.mrf.mxu0 }
0x1d5a   :  { %v1977_v25 = vpop.eup %1976 }
0x1d5b   :  { %v1372_v26 = vmul.f32 %v1977_v25, %v2134_v34 }
0x1d5d   :  { %v1373_v27 = vadd.f32 %v1372_v26, %v2152_v47 }
0x1d5f   :  { %1376 = vrot.lane.b32.xlu0 %v1373_v27, %s2018_s20  ;;  %v1374_v30 = vmul.f32 %v1373_v27, %v1314_v10 }
0x1dd1   :  { %v1377_v23 = vpop.permute.xlu0 %1376 }
0x1dd2   :  { %v1379_v28 = vmul.f32 %v1377_v23, %v1373_v27 }
0x1dd4   :  { %1381 = vrot.lane.b32.xlu1 %v1379_v28, %s2021_s25 }
0x1e46   :  { %v1382_v16 = vpop.permute.xlu1 %1381 }
0x1e47   :  { %v1384_v52 = vadd.f32 %v1382_v16, %v1374_v30  ;;  %v1604_v16 = vrot.slane %v1992_v59, %v1603_v7 }
0x1e49   :  { %1978 = vtanh.f32 %v1384_v52 }
0x1e56   :  { %v1979_v32 = vpop.eup %1978 }
0x1e57   :  { %1387 = vrot.lane.b32.xlu0 %v1979_v32, %s2018_s20 }
0x1ec9   :  { %v1388_v6 = vpop.permute.xlu0 %1387 }
0x1eca   :  { %v1390_v35 = vmul.f32 %v1388_v6, %v1373_v27 }
0x1ecc   :  { %v1392_v54 = vpack.c.bf16 %v1390_v35, %v1390_v35 }
0x1ece   :  { %1394 = vrot.lane.b32.xlu1 %v1392_v54, %s2021_s25 }
0x1f40   :  { %v1395_v29 = vpop.permute.xlu1 %1394 }
0x1f41   :  { %1890 = vmatmul.mubr.msk.bf16.vlgmr.msra.gmra.mxu1 %vm70_vm0, %v1395_v29 }
0x1f42   :  { %1902 = vmatpush3.bf16.msra.mxu1 %v2335_v31  ;;  %1905 = vmatprep.mubr.msk.bf16.mxu1 %vm2020_vm4, %v2019_v53 }
0x1f43   :  { %1903 = vmatprep.subr.bf16.mxu1 %v2019_v53 }
0x1f46   :  { %1904 = vmatpush3.bf16.msra.mxu1 %v2342_v33 }
0x2001   :  { %v1433_v40 = vpop.f32.mrf.mxu1 }
0x2002   :  { %v1439_v42 = vadd.f32 %v1433_v40, %v1060_v39 }
0x2003   :  { %v1891_v44 = vpop.f32.mrf.mxu1 }
0x2004   :  { %v1440_v46 = vmul.f32 %v1439_v42, %v2134_v34  ;;  %v1619_v42 = vsub.s32 4, %v2091_v17 }
0x2005   :  { %v1436_v49 = vpop.f32.mrf.mxu1 }
0x2006   :  { %1980 = vtanh.f32 %v1440_v46  ;;  %v1620_v44 = vrot.slane %v1992_v59, %v1619_v42 }
0x2007   :  { %v1892_v50 = vpop.f32.mrf.mxu1 }
0x2013   :  { %v1981_v57 = vpop.eup %1980 }
0x2014   :  { %v1442_v31 = vmul.f32 %v1981_v57, %v2134_v34 }
0x2016   :  { %v1443_v37 = vadd.f32 %v1442_v31, %v2152_v47 }
0x2018   :  { %1446 = vrot.lane.b32.xlu0 %v1443_v37, %s2018_s20  ;;  %v1444_v48 = vmul.f32 %v1443_v37, %v1384_v52 }
0x208a   :  { %v1447_v53 = vpop.permute.xlu0 %1446 }
0x208b   :  { %v1449_v33 = vmul.f32 %v1447_v53, %v1443_v37 }
0x208d   :  { %1451 = vrot.lane.b32.xlu1 %v1449_v33, %s2021_s25 }
0x20ff   :  { %v1452_v51 = vpop.permute.xlu1 %1451 }
0x2100   :  { %v1454_v55 = vadd.f32 %v1452_v51, %v1444_v48 }
0x2102   :  { %1982 = vtanh.f32 %v1454_v55 }
0x210f   :  { %v1983_v56 = vpop.eup %1982 }
0x2110   :  { %1457 = vrot.lane.b32.xlu0 %v1983_v56, %s2018_s20 }
0x2182   :  { %v1458_v58 = vpop.permute.xlu0 %1457 }
0x2183   :  { %v1460_v45 = vmul.f32 %v1458_v58, %v1443_v37 }
0x2185   :  { %v1462_v60 = vpack.c.bf16 %v1460_v45, %v1460_v45 }
0x2187   :  { %1464 = vrot.lane.b32.xlu1 %v1462_v60, %s2021_s25 }
0x21f9   :  { %v1465_v61 = vpop.permute.xlu1 %1464 }
0x21fa   :  { %1898 = vmatmul.mubr.msk.bf16.vlgmr.msra.gmra.mxu0 %vm70_vm0, %v1465_v61 }
0x22ba   :  { %v1503_v38 = vpop.f32.mrf.mxu0 }
0x22bb   :  { %v1509_v63 = vadd.f32 %v1503_v38, %v1065_v62 }
0x22bc   :  { %v1899_v0 = vpop.f32.mrf.mxu0 }
0x22bd   :  { %v1510_v1 = vmul.f32 %v1509_v63, %v2134_v34 }
0x22be   :  { %v1506_v2 = vpop.f32.mrf.mxu0 }
0x22bf   :  { %1984 = vtanh.f32 %v1510_v1 }
0x22c0   :  { %v1900_v3 = vpop.f32.mrf.mxu0 }
0x22cc   :  { %v1985_v4 = vpop.eup %1984 }
0x22cd   :  { %v1512_v5 = vmul.f32 %v1985_v4, %v2134_v34 }
0x22cf   :  { %v1513_v8 = vadd.f32 %v1512_v5, %v2152_v47 }
0x22d1   :  { %1516 = vrot.lane.b32.xlu0 %v1513_v8, %s2018_s20  ;;  %v1514_v14 = vmul.f32 %v1513_v8, %v1454_v55 }
0x2343   :  { %v1517_v36 = vpop.permute.xlu0 %1516 }
0x2344   :  { %v1519_v9 = vmul.f32 %v1517_v36, %v1513_v8 }
0x2346   :  { %1521 = vrot.lane.b32.xlu1 %v1519_v9, %s2021_s25 }
0x23b8   :  { %v1522_v10 = vpop.permute.xlu1 %1521 }
0x23b9   :  { %v1524_v41 = vadd.f32 %v1522_v10, %v1514_v14 }
0x23bb   :  { %1986 = vtanh.f32 %v1524_v41 }
0x23c8   :  { %v1987_v11 = vpop.eup %1986 }
0x23c9   :  { %1527 = vrot.lane.b32.xlu0 %v1987_v11, %s2018_s20 }
0x243b   :  { %v1528_v12 = vpop.permute.xlu0 %1527 }
0x243c   :  { %v1530_v13 = vmul.f32 %v1528_v12, %v1513_v8 }
0x243e   :  { %v1532_v15 = vpack.c.bf16 %v1530_v13, %v1530_v13 }
0x2440   :  { %1534 = vrot.lane.b32.xlu1 %v1532_v15, %s2021_s25 }
0x24b2   :  { %v1535_v19 = vpop.permute.xlu1 %1534 }
0x24b3   :  { %1906 = vmatmul.mubr.msk.bf16.vlgmr.msra.gmra.mxu1 %vm70_vm0, %v1535_v19 }
0x2573   :  { %v1573_v20 = vpop.f32.mrf.mxu1 }
0x2574   :  { %v1579_v43 = vadd.f32 %v1573_v20, %v1068_v18 }
0x2575   :  { %v1907_v21 = vpop.f32.mrf.mxu1 }
0x2576   :  { %v1580_v22 = vmul.f32 %v1579_v43, %v2134_v34 }
0x2577   :  { %v1576_v24 = vpop.f32.mrf.mxu1 }
0x2578   :  { %1988 = vtanh.f32 %v1580_v22 }
0x2579   :  { %v1908_v25 = vpop.f32.mrf.mxu1 }
0x2585   :  { %v1989_v26 = vpop.eup %1988 }
0x2586   :  { %v1582_v27 = vmul.f32 %v1989_v26, %v2134_v34 }
0x2588   :  { %v1583_v23 = vadd.f32 %v1582_v27, %v2152_v47 }
0x258a   :  { %1586 = vrot.lane.b32.xlu0 %v1583_v23, %s2018_s20  ;;  %v1584_v52 = vmul.f32 %v1583_v23, %v1524_v41 }
0x25fc   :  { %v1587_v28 = vpop.permute.xlu0 %1586 }
0x25fd   :  { %v1589_v30 = vmul.f32 %v1587_v28, %v1583_v23 }
0x25ff   :  { %1591 = vrot.lane.b32.xlu1 %v1589_v30, %s2021_s25 }
0x2603   :  { %1606 = vrot.lane.b32.xlu1 %v1604_v16, %s2016_s0 }
0x2671   :  { %v1592_v32 = vpop.permute.xlu1 %1591 }
0x2672   :  { %v1594_v6 = vadd.f32 %v1592_v32, %v1584_v52 }
0x2674   :  { %1990 = vtanh.f32 %v1594_v6 }
0x2675   :  { %v1607_v47 = vpop.permute.xlu1 %1606 }
0x2681   :  { %v1991_v35 = vpop.eup %1990 }
0x2682   :  { %1597 = vrot.lane.b32.xlu0 %v1991_v35, %s2018_s20 }
0x26f4   :  { %v1598_v34 = vpop.permute.xlu0 %1597 }
0x26f5   :  { %v1600_v54 = vmul.f32 %v1598_v34, %v1583_v23 }
0x26f7   :  { %v1609_v29 = vmul.f32 %v1607_v47, %v1600_v54 }
0x26f9   :  { %1611 = vrot.lane.b32.xlu0 %v1609_v29, %s2021_s25 }
0x276b   :  { %v1612_v39 = vpop.permute.xlu0 %1611 }
0x276c   :  { %v1614_v40 = vsel %vm70_vm0, %v1612_v39, 0.0 }
0x276d   :  { %1615 = vadd.xlane.f32.xlu1 %v1614_v40 }
0x27f6   :  { %v1616_v46 = vpop.xlane.xlu1 %1615 }
0x27f7   :  { %v1621_v49 = vadd.f32 %v1620_v44, %v1616_v46 }
0x27f9   :  { %1623 = vst.msk [vmem:[%s2496_s4] sm:$0xff] %vm1622_vm5, %v1621_v49 }
0x27fa   :  { %1628 = vsyncpa [#allocation5], 1 }

</bundles_post_ra>
